<compile_context>
chip_gen: v7x
topology: tpu7x:2x2x1
jax: 0.10.0
libtpu: 0.0.40
codegen_flags: <defaults>
</compile_context>

<pallas_src>
import functools

import jax
import jax.numpy as jnp
from jax import lax
from jax.experimental import pallas as pl
from jax.experimental.pallas import tpu as pltpu


# ----------------------------------------------------------------------------- #
# Config (small, self-contained; nlayers = 1 as configured)
# ----------------------------------------------------------------------------- #
CFG = dict(
    word_vocab=50, word_size=12, ninp_word=12,
    pos_vocab=20, pos_size=10, ninp_pos=10,
    word_nhid=16, pos_nhid=8, nlayers=1,
    attention_unit=10, attention_hops=4,
    pad_id=0,  # dictionary['<pad>']
)
B, T = 2, 8

_VMEM = pl.BlockSpec(memory_space=pltpu.MemorySpace.VMEM)


# ----------------------------------------------------------------------------- #
# In-kernel helpers (operate on traced values; loops are static / unrolled)
# ----------------------------------------------------------------------------- #
def _bilstm_unrolled(pre_flat, whh, T_, B_, H):
    """Fused fwd+bwd LSTM recurrence.

    pre_flat : (T*B, 8H)  packed input pre-activations, gate-interleaved
               layout per gate g: [fwd gate-g (H) | bwd gate-g (H)].
    whh      : (2H, 8H)   block-diagonal recurrent weights in the same layout.
    Returns a list of T values of shape (B, 2H): [h_fwd(t) || h_bwd(t)].
    """
    G = 8 * H
    lane = lax.broadcasted_iota(jnp.int32, (1, G), 1)
    if (2 * H) & (2 * H - 1) == 0:                      # 2H is a power of two
        gate_lane = jnp.bitwise_and(lane, 2 * H - 1)
    else:
        gate_lane = lane % (2 * H)
    m_fwd = (gate_lane < H).astype(jnp.float32)         # 1.0 on fwd lanes
    pre_f = pre_flat * m_fwd                             # fwd-direction terms
    pre_b = pre_flat * (1.0 - m_fwd)                     # bwd-direction terms

    h = jnp.zeros((B_, 2 * H), jnp.float32)              # [h_fwd | h_bwd]
    c = jnp.zeros((B_, 2 * H), jnp.float32)
    hs = []
    for s in range(T_):                                   # fully unrolled (T static)
        # fwd processes time s, bwd processes time T-1-s in the same step.
        pre_s = (pre_f[s * B_:(s + 1) * B_, :]
                 + pre_b[(T_ - 1 - s) * B_:(T_ - s) * B_, :])            # (B, 8H)
        gates = pre_s + jnp.dot(h, whh, preferred_element_type=jnp.float32)
        i = jax.nn.sigmoid(gates[:, 0 * 2 * H:1 * 2 * H])                # (B, 2H)
        f = jax.nn.sigmoid(gates[:, 1 * 2 * H:2 * 2 * H])
        g = jnp.tanh(gates[:, 2 * 2 * H:3 * 2 * H])
        o = jax.nn.sigmoid(gates[:, 3 * 2 * H:4 * 2 * H])
        c = f * c + i * g
        h = o * jnp.tanh(c)
        hs.append(h)

    # hs[s] = [h_fwd(time s) || h_bwd(time T-1-s)] -> recombine per time step.
    return [jnp.concatenate([hs[t][:, :H], hs[T_ - 1 - t][:, H:]], axis=1)
            for t in range(T_)]


def _attention(outs, mask, ws1, ws2, T_, B_):
    """Structured self-attention (ws1 -> tanh -> ws2 -> pad-penalized softmax
    over time -> bmm).  outs: list of T (B, D2) values; mask: (B, T) value."""
    res = []
    for b in range(B_):                                   # B = 2, static loop
        x_b = jnp.concatenate([outs[t][b:b + 1, :] for t in range(T_)], axis=0)  # (T, D2)
        hbar = jnp.tanh(jnp.dot(x_b, ws1, preferred_element_type=jnp.float32))   # (T, A)
        # scores directly in (hops, T) layout (no transpose):
        scores = lax.dot_general(ws2, hbar, (((0,), (1,)), ((), ())),
                                 preferred_element_type=jnp.float32)             # (hops, T)
        pen = scores - 10000.0 * mask[b:b + 1, :]
        pen = pen - jnp.max(pen, axis=-1, keepdims=True)
        e = jnp.exp(pen)
        alphas = e / jnp.sum(e, axis=-1, keepdims=True)                           # (hops, T)
        o_b = jnp.dot(alphas, x_b, preferred_element_type=jnp.float32)            # (hops, D2)
        res.append((o_b, alphas))
    return res


# ----------------------------------------------------------------------------- #
# The single fused kernel
# ----------------------------------------------------------------------------- #
def fused_kernel(we_ref, pe_ref, wmask_ref, pmask_ref,
                 wwih_ref, wwhh_ref, wb_ref,
                 pwih_ref, pwhh_ref, pb_ref,
                 wws1_ref, wws2_ref, pws1_ref, pws2_ref,
                 out_ref, *, T_, B_, Hw, Hp):
    # ---- input projections hoisted out of the recurrences (one matmul each)
    pre_w = (jnp.dot(we_ref[...], wwih_ref[...], preferred_element_type=jnp.float32)
             + wb_ref[...])                               # (T*B, 8*Hw) = (16, 128)
    pre_p = (jnp.dot(pe_ref[...], pwih_ref[...], preferred_element_type=jnp.float32)
             + pb_ref[...])                               # (T*B, 8*Hp) = (16, 64)

    # ---- fused fwd+bwd BiLSTM recurrences (everything stays in registers)
    word_outs = _bilstm_unrolled(pre_w, wwhh_ref[...], T_, B_, Hw)   # T x (B, 2Hw)
    pos_outs = _bilstm_unrolled(pre_p, pwhh_ref[...], T_, B_, Hp)    # T x (B, 2Hp)

    # ---- structured self-attention for both streams
    wmask = wmask_ref[...]
    pmask = pmask_ref[...]
    w_att = _attention(word_outs, wmask, wws1_ref[...], wws2_ref[...], T_, B_)
    p_att = _attention(pos_outs, pmask, pws1_ref[...], pws2_ref[...], T_, B_)

    # ---- pack [word_o | pos_o | word_a | pos_a] into one lane-dense slab
    for b in range(B_):
        wo, wa = w_att[b]
        po, pa = p_att[b]
        out_ref[b] = jnp.concatenate([wo, po, wa, pa], axis=1)  # (hops, 2Hw+2Hp+2T)


# ----------------------------------------------------------------------------- #
# Weight packing (plain JAX, done once): interleave fwd/bwd gate columns and
# build the block-diagonal recurrent matrix used by the fused recurrence.
# ----------------------------------------------------------------------------- #
def _pack_dir_cols(wf, wb, H):
    """(.., 4H) fwd + (.., 4H) bwd -> (.., 8H) with per-gate [fwd | bwd] blocks."""
    parts = []
    for g in range(4):
        parts.append(wf[..., g * H:(g + 1) * H])
        parts.append(wb[..., g * H:(g + 1) * H])
    return jnp.concatenate(parts, axis=-1)


def _pack_lstm(wih_f, whh_f, b_f, wih_b, whh_b, b_b, H):
    wih = _pack_dir_cols(wih_f, wih_b, H)                 # (Din, 8H)
    bias = _pack_dir_cols(b_f, b_b, H)                    # (1, 8H)
    whh = jnp.zeros((2 * H, 8 * H), jnp.float32)          # block-diagonal
    for g in range(4):
        whh = whh.at[:H, g * 2 * H:g * 2 * H + H].set(whh_f[:, g * H:(g + 1) * H])
        whh = whh.at[H:, g * 2 * H + H:(g + 1) * 2 * H].set(whh_b[:, g * H:(g + 1) * H])
    return wih, whh, bias


# ----------------------------------------------------------------------------- #
# Forward wrapper (matches SelfAttentiveEncoder.forward semantics)
# ----------------------------------------------------------------------------- #
def self_attentive_encoder_forward(kparams, word_ids, pos_ids, hidden=None):
    """Returns (word_o, pos_o, word_a, pos_a).  `hidden` = init_hidden() zeros."""
    B_, T_ = word_ids.shape
    Hw, Hp = CFG["word_nhid"], CFG["pos_nhid"]
    hops = CFG["attention_hops"]

    # Embedding gathers + mask construction: plain-JAX glue.
    word_emb = kparams["word_matrix"][word_ids]           # (B, T, ninp_word)
    pos_emb = kparams["pos_matrix"][pos_ids]              # (B, T, ninp_pos)
    we_flat = jnp.transpose(word_emb, (1, 0, 2)).reshape(T_ * B_, -1)   # time-major rows
    pe_flat = jnp.transpose(pos_emb, (1, 0, 2)).reshape(T_ * B_, -1)
    wmask = (word_ids == CFG["pad_id"]).astype(jnp.float32)             # (B, T)
    pmask = (pos_ids == CFG["pad_id"]).astype(jnp.float32)

    Dw, Dp = 2 * Hw, 2 * Hp
    packed = pl.pallas_call(
        functools.partial(fused_kernel, T_=T_, B_=B_, Hw=Hw, Hp=Hp),
        out_shape=jax.ShapeDtypeStruct((B_, hops, Dw + Dp + 2 * T_), jnp.float32),
        in_specs=[_VMEM] * 14,
        out_specs=_VMEM,
    )(we_flat, pe_flat, wmask, pmask,
      kparams["w_wih"], kparams["w_whh"], kparams["w_b"],
      kparams["p_wih"], kparams["p_whh"], kparams["p_b"],
      kparams["word_ws1"], kparams["word_ws2"],
      kparams["pos_ws1"], kparams["pos_ws2"])

    word_o = packed[:, :, :Dw]
    pos_o = packed[:, :, Dw:Dw + Dp]
    word_a = packed[:, :, Dw + Dp:Dw + Dp + T_]
    pos_a = packed[:, :, Dw + Dp + T_:]
    return word_o, pos_o, word_a, pos_a


# ----------------------------------------------------------------------------- #
# Deterministic parameter initialization (raw PyTorch-style layout) + packing
# ----------------------------------------------------------------------------- #
def init_raw_params(key):
    keys = iter(jax.random.split(key, 24))
    u = lambda shape, s=0.1: jax.random.uniform(next(keys), shape, jnp.float32, -s, s)
    Hw, Hp = CFG["word_nhid"], CFG["pos_nhid"]
    A, hops = CFG["attention_unit"], CFG["attention_hops"]

    def lstm_dirs(din, h):
        # Per direction: (W_ih, W_hh, b); b corresponds to PyTorch's b_ih + b_hh.
        return (u((din, 4 * h)), u((h, 4 * h)), u((1, 4 * h)),
                u((din, 4 * h)), u((h, 4 * h)), u((1, 4 * h)))

    return dict(
        word_matrix=jax.random.normal(next(keys), (CFG["word_vocab"], CFG["word_size"]),
                                      jnp.float32) * 0.1,
        pos_matrix=jax.random.normal(next(keys), (CFG["pos_vocab"], CFG["pos_size"]),
                                     jnp.float32) * 0.1,
        word_lstm=lstm_dirs(CFG["ninp_word"], Hw),
        pos_lstm=lstm_dirs(CFG["ninp_pos"], Hp),
        word_ws1=u((2 * Hw, A)), word_ws2=u((A, hops)),
        pos_ws1=u((2 * Hp, A)), pos_ws2=u((A, hops)),
    )


def pack_params(raw):
    Hw, Hp = CFG["word_nhid"], CFG["pos_nhid"]
    w_wih, w_whh, w_b = _pack_lstm(*raw["word_lstm"], Hw)
    p_wih, p_whh, p_b = _pack_lstm(*raw["pos_lstm"], Hp)
    return dict(
        word_matrix=raw["word_matrix"], pos_matrix=raw["pos_matrix"],
        w_wih=w_wih, w_whh=w_whh, w_b=w_b,
        p_wih=p_wih, p_whh=p_whh, p_b=p_b,
        word_ws1=raw["word_ws1"], word_ws2=raw["word_ws2"],
        pos_ws1=raw["pos_ws1"], pos_ws2=raw["pos_ws2"],
    )


# ----------------------------------------------------------------------------- #
# Pure-JAX reference (mirrors the PyTorch module) for in-script validation
# ----------------------------------------------------------------------------- #
def _lstm_dir_ref(x_tm, wih, whh, b, H):
    def step(carry, x_t):
        h, c = carry
        gates = x_t @ wih + h @ whh + b
        i = jax.nn.sigmoid(gates[:, :H])
        f = jax.nn.sigmoid(gates[:, H:2 * H])
        g = jnp.tanh(gates[:, 2 * H:3 * H])
        o = jax.nn.sigmoid(gates[:, 3 * H:])
        c = f * c + i * g
        h = o * jnp.tanh(c)
        return (h, c), h
    Bn = x_tm.shape[1]
    init = (jnp.zeros((Bn, H), jnp.float32), jnp.zeros((Bn, H), jnp.float32))
    return lax.scan(step, init, x_tm)[1]                  # (T, B, H)


def reference_forward(raw, word_ids, pos_ids):
    def bilstm(emb, p, H):
        wih_f, whh_f, b_f, wih_b, whh_b, b_b = p
        x = jnp.transpose(emb, (1, 0, 2))
        h_f = _lstm_dir_ref(x, wih_f, whh_f, b_f, H)
        h_b = _lstm_dir_ref(x[::-1], wih_b, whh_b, b_b, H)[::-1]
        return jnp.transpose(jnp.concatenate([h_f, h_b], axis=-1), (1, 0, 2))  # (B,T,2H)

    def attention(outp, ids, ws1, ws2):
        hbar = jnp.tanh(outp @ ws1)                        # (B, T, A)
        alphas = jnp.transpose(hbar @ ws2, (0, 2, 1))      # (B, hops, T)
        mask = (ids == CFG["pad_id"]).astype(jnp.float32)[:, None, :]
        a = jax.nn.softmax(alphas - 10000.0 * mask, axis=-1)
        return jnp.einsum("bht,btd->bhd", a, outp), a

    word_outp = bilstm(raw["word_matrix"][word_ids], raw["word_lstm"], CFG["word_nhid"])
    pos_outp = bilstm(raw["pos_matrix"][pos_ids], raw["pos_lstm"], CFG["pos_nhid"])
    w_o, w_a = attention(word_outp, word_ids, raw["word_ws1"], raw["word_ws2"])
    p_o, p_a = attention(pos_outp, pos_ids, raw["pos_ws1"], raw["pos_ws2"])
    return w_o, p_o, w_a, p_a


# ----------------------------------------------------------------------------- #
if __name__ == "__main__":
    key = jax.random.PRNGKey(0)
    pkey, wkey, ikey = jax.random.split(key, 3)
    raw = init_raw_params(pkey)
    kparams = pack_params(raw)

    word_ids = jax.random.randint(wkey, (B, T), 0, CFG["word_vocab"], jnp.int32)
    pos_ids = jax.random.randint(ikey, (B, T), 0, CFG["pos_vocab"], jnp.int32)
    # A couple of <pad> tokens to exercise the attention mask.
    word_ids = word_ids.at[:, -2:].set(CFG["pad_id"])
    pos_ids = pos_ids.at[:, -2:].set(CFG["pad_id"])

    word_o, pos_o, word_a, pos_a = self_attentive_encoder_forward(
        kparams, word_ids, pos_ids, hidden=None)
    jax.block_until_ready((word_o, pos_o, word_a, pos_a))

    hops = CFG["attention_hops"]
    assert word_o.shape == (B, hops, 2 * CFG["word_nhid"])
    assert pos_o.shape == (B, hops, 2 * CFG["pos_nhid"])
    assert word_a.shape == (B, hops, T)
    assert pos_a.shape == (B, hops, T)

    # Validate against the pure-JAX reference of the PyTorch module.
    r_wo, r_po, r_wa, r_pa = reference_forward(raw, word_ids, pos_ids)
    for name, got, ref in (("word_o", word_o, r_wo), ("pos_o", pos_o, r_po),
                           ("word_a", word_a, r_wa), ("pos_a", pos_a, r_pa)):
        err = float(jnp.max(jnp.abs(got - ref)))
        assert err < 5e-3, f"{name} mismatch vs reference: max abs err {err}"

    print("KERNEL_OK")
</pallas_src>

<mosaic_0001>
module attributes {stable_mosaic.version = 11 : i64} {
  func.func @fused_kernel(%arg0: memref<16x12xf32, #tpu.memory_space<vmem>>, %arg1: memref<16x10xf32, #tpu.memory_space<vmem>>, %arg2: memref<2x8xf32, #tpu.memory_space<vmem>>, %arg3: memref<2x8xf32, #tpu.memory_space<vmem>>, %arg4: memref<12x128xf32, #tpu.memory_space<vmem>>, %arg5: memref<32x128xf32, #tpu.memory_space<vmem>>, %arg6: memref<1x128xf32, #tpu.memory_space<vmem>>, %arg7: memref<10x64xf32, #tpu.memory_space<vmem>>, %arg8: memref<16x64xf32, #tpu.memory_space<vmem>>, %arg9: memref<1x64xf32, #tpu.memory_space<vmem>>, %arg10: memref<32x10xf32, #tpu.memory_space<vmem>>, %arg11: memref<10x4xf32, #tpu.memory_space<vmem>>, %arg12: memref<16x10xf32, #tpu.memory_space<vmem>>, %arg13: memref<10x4xf32, #tpu.memory_space<vmem>>, %arg14: memref<2x4x64xf32, #tpu.memory_space<vmem>>) attributes {dimension_semantics = [], scalar_prefetch = 0 : i64, scratch_operands = 0 : i64, tpu.core_type = #tpu.core_type<tc>} {
    %c0 = arith.constant 0 : index
    %c0_0 = arith.constant 0 : index
    %0 = vector.load %arg0[%c0, %c0_0] : memref<16x12xf32, #tpu.memory_space<vmem>>, vector<16x12xf32>
    %c0_1 = arith.constant 0 : index
    %c0_2 = arith.constant 0 : index
    %1 = vector.load %arg4[%c0_1, %c0_2] : memref<12x128xf32, #tpu.memory_space<vmem>>, vector<12x128xf32>
    %cst = arith.constant dense<0.000000e+00> : vector<16x128xf32>
    %2 = tpu.matmul %0, %1, %cst {dimension_numbers = #tpu.dot_dimension_numbers<[1], [0], [0], [1], [0, 0, 1, 1], [], []>} : vector<16x12xf32>, vector<12x128xf32>, vector<16x128xf32> -> vector<16x128xf32>
    %c0_3 = arith.constant 0 : index
    %c0_4 = arith.constant 0 : index
    %3 = vector.load %arg6[%c0_3, %c0_4] : memref<1x128xf32, #tpu.memory_space<vmem>>, vector<1x128xf32>
    %4 = vector.broadcast %3 : vector<1x128xf32> to vector<16x128xf32>
    %5 = arith.addf %2, %4 : vector<16x128xf32>
    %c0_5 = arith.constant 0 : index
    %c0_6 = arith.constant 0 : index
    %6 = vector.load %arg1[%c0_5, %c0_6] : memref<16x10xf32, #tpu.memory_space<vmem>>, vector<16x10xf32>
    %c0_7 = arith.constant 0 : index
    %c0_8 = arith.constant 0 : index
    %7 = vector.load %arg7[%c0_7, %c0_8] : memref<10x64xf32, #tpu.memory_space<vmem>>, vector<10x64xf32>
    %cst_9 = arith.constant dense<0.000000e+00> : vector<16x64xf32>
    %8 = tpu.matmul %6, %7, %cst_9 {dimension_numbers = #tpu.dot_dimension_numbers<[1], [0], [0], [1], [0, 0, 1, 1], [], []>} : vector<16x10xf32>, vector<10x64xf32>, vector<16x64xf32> -> vector<16x64xf32>
    %c0_10 = arith.constant 0 : index
    %c0_11 = arith.constant 0 : index
    %9 = vector.load %arg9[%c0_10, %c0_11] : memref<1x64xf32, #tpu.memory_space<vmem>>, vector<1x64xf32>
    %10 = vector.broadcast %9 : vector<1x64xf32> to vector<16x64xf32>
    %11 = arith.addf %8, %10 : vector<16x64xf32>
    %c0_12 = arith.constant 0 : index
    %c0_13 = arith.constant 0 : index
    %12 = vector.load %arg5[%c0_12, %c0_13] : memref<32x128xf32, #tpu.memory_space<vmem>>, vector<32x128xf32>
    %13 = tpu.iota {dimensions = array<i32: 1>} : vector<1x128xi32>
    %c31_i32 = arith.constant 31 : i32
    %14 = vector.broadcast %c31_i32 : i32 to vector<1x128xi32>
    %15 = arith.andi %13, %14 : vector<1x128xi32>
    %c16_i32 = arith.constant 16 : i32
    %16 = vector.broadcast %c16_i32 : i32 to vector<1x128xi32>
    %17 = arith.cmpi slt, %15, %16 : vector<1x128xi32>
    %18 = arith.extui %17 : vector<1x128xi1> to vector<1x128xi32>
    %19 = arith.sitofp %18 : vector<1x128xi32> to vector<1x128xf32>
    %20 = vector.broadcast %19 : vector<1x128xf32> to vector<16x128xf32>
    %21 = arith.mulf %5, %20 : vector<16x128xf32>
    %cst_14 = arith.constant 1.000000e+00 : f32
    %22 = vector.broadcast %cst_14 : f32 to vector<1x128xf32>
    %23 = arith.subf %22, %19 : vector<1x128xf32>
    %24 = vector.broadcast %23 : vector<1x128xf32> to vector<16x128xf32>
    %25 = arith.mulf %5, %24 : vector<16x128xf32>
    %cst_15 = arith.constant 0.000000e+00 : f32
    %26 = vector.broadcast %cst_15 : f32 to vector<2x32xf32>
    %cst_16 = arith.constant 0.000000e+00 : f32
    %27 = vector.broadcast %cst_16 : f32 to vector<2x32xf32>
    %28 = vector.extract_strided_slice %21 {offsets = [0, 0], sizes = [2, 128], strides = [1, 1]} : vector<16x128xf32> to vector<2x128xf32>
    %29 = vector.extract_strided_slice %25 {offsets = [14, 0], sizes = [2, 128], strides = [1, 1]} : vector<16x128xf32> to vector<2x128xf32>
    %30 = arith.addf %28, %29 : vector<2x128xf32>
    %cst_17 = arith.constant dense<0.000000e+00> : vector<2x128xf32>
    %31 = tpu.matmul %26, %12, %cst_17 {dimension_numbers = #tpu.dot_dimension_numbers<[1], [0], [0], [1], [0, 0, 1, 1], [], []>} : vector<2x32xf32>, vector<32x128xf32>, vector<2x128xf32> -> vector<2x128xf32>
    %32 = arith.addf %30, %31 : vector<2x128xf32>
    %33 = vector.extract_strided_slice %32 {offsets = [0, 0], sizes = [2, 32], strides = [1, 1]} : vector<2x128xf32> to vector<2x32xf32>
    %34 = arith.negf %33 : vector<2x32xf32>
    %35 = math.exp %34 : vector<2x32xf32>
    %cst_18 = arith.constant 1.000000e+00 : f32
    %36 = vector.broadcast %cst_18 : f32 to vector<2x32xf32>
    %37 = arith.addf %36, %35 : vector<2x32xf32>
    %38 = arith.divf %36, %37 : vector<2x32xf32>
    %39 = vector.extract_strided_slice %32 {offsets = [0, 32], sizes = [2, 32], strides = [1, 1]} : vector<2x128xf32> to vector<2x32xf32>
    %40 = arith.negf %39 : vector<2x32xf32>
    %41 = math.exp %40 : vector<2x32xf32>
    %cst_19 = arith.constant 1.000000e+00 : f32
    %42 = vector.broadcast %cst_19 : f32 to vector<2x32xf32>
    %43 = arith.addf %42, %41 : vector<2x32xf32>
    %44 = arith.divf %42, %43 : vector<2x32xf32>
    %45 = vector.extract_strided_slice %32 {offsets = [0, 64], sizes = [2, 32], strides = [1, 1]} : vector<2x128xf32> to vector<2x32xf32>
    %46 = math.tanh %45 : vector<2x32xf32>
    %47 = vector.extract_strided_slice %32 {offsets = [0, 96], sizes = [2, 32], strides = [1, 1]} : vector<2x128xf32> to vector<2x32xf32>
    %48 = arith.negf %47 : vector<2x32xf32>
    %49 = math.exp %48 : vector<2x32xf32>
    %cst_20 = arith.constant 1.000000e+00 : f32
    %50 = vector.broadcast %cst_20 : f32 to vector<2x32xf32>
    %51 = arith.addf %50, %49 : vector<2x32xf32>
    %52 = arith.divf %50, %51 : vector<2x32xf32>
    %53 = arith.mulf %44, %27 : vector<2x32xf32>
    %54 = arith.mulf %38, %46 : vector<2x32xf32>
    %55 = arith.addf %53, %54 : vector<2x32xf32>
    %56 = math.tanh %55 : vector<2x32xf32>
    %57 = arith.mulf %52, %56 : vector<2x32xf32>
    %58 = vector.extract_strided_slice %21 {offsets = [2, 0], sizes = [2, 128], strides = [1, 1]} : vector<16x128xf32> to vector<2x128xf32>
    %59 = vector.extract_strided_slice %25 {offsets = [12, 0], sizes = [2, 128], strides = [1, 1]} : vector<16x128xf32> to vector<2x128xf32>
    %60 = arith.addf %58, %59 : vector<2x128xf32>
    %cst_21 = arith.constant dense<0.000000e+00> : vector<2x128xf32>
    %61 = tpu.matmul %57, %12, %cst_21 {dimension_numbers = #tpu.dot_dimension_numbers<[1], [0], [0], [1], [0, 0, 1, 1], [], []>} : vector<2x32xf32>, vector<32x128xf32>, vector<2x128xf32> -> vector<2x128xf32>
    %62 = arith.addf %60, %61 : vector<2x128xf32>
    %63 = vector.extract_strided_slice %62 {offsets = [0, 0], sizes = [2, 32], strides = [1, 1]} : vector<2x128xf32> to vector<2x32xf32>
    %64 = arith.negf %63 : vector<2x32xf32>
    %65 = math.exp %64 : vector<2x32xf32>
    %cst_22 = arith.constant 1.000000e+00 : f32
    %66 = vector.broadcast %cst_22 : f32 to vector<2x32xf32>
    %67 = arith.addf %66, %65 : vector<2x32xf32>
    %68 = arith.divf %66, %67 : vector<2x32xf32>
    %69 = vector.extract_strided_slice %62 {offsets = [0, 32], sizes = [2, 32], strides = [1, 1]} : vector<2x128xf32> to vector<2x32xf32>
    %70 = arith.negf %69 : vector<2x32xf32>
    %71 = math.exp %70 : vector<2x32xf32>
    %cst_23 = arith.constant 1.000000e+00 : f32
    %72 = vector.broadcast %cst_23 : f32 to vector<2x32xf32>
    %73 = arith.addf %72, %71 : vector<2x32xf32>
    %74 = arith.divf %72, %73 : vector<2x32xf32>
    %75 = vector.extract_strided_slice %62 {offsets = [0, 64], sizes = [2, 32], strides = [1, 1]} : vector<2x128xf32> to vector<2x32xf32>
    %76 = math.tanh %75 : vector<2x32xf32>
    %77 = vector.extract_strided_slice %62 {offsets = [0, 96], sizes = [2, 32], strides = [1, 1]} : vector<2x128xf32> to vector<2x32xf32>
    %78 = arith.negf %77 : vector<2x32xf32>
    %79 = math.exp %78 : vector<2x32xf32>
    %cst_24 = arith.constant 1.000000e+00 : f32
    %80 = vector.broadcast %cst_24 : f32 to vector<2x32xf32>
    %81 = arith.addf %80, %79 : vector<2x32xf32>
    %82 = arith.divf %80, %81 : vector<2x32xf32>
    %83 = arith.mulf %74, %55 : vector<2x32xf32>
    %84 = arith.mulf %68, %76 : vector<2x32xf32>
    %85 = arith.addf %83, %84 : vector<2x32xf32>
    %86 = math.tanh %85 : vector<2x32xf32>
    %87 = arith.mulf %82, %86 : vector<2x32xf32>
    %88 = vector.extract_strided_slice %21 {offsets = [4, 0], sizes = [2, 128], strides = [1, 1]} : vector<16x128xf32> to vector<2x128xf32>
    %89 = vector.extract_strided_slice %25 {offsets = [10, 0], sizes = [2, 128], strides = [1, 1]} : vector<16x128xf32> to vector<2x128xf32>
    %90 = arith.addf %88, %89 : vector<2x128xf32>
    %cst_25 = arith.constant dense<0.000000e+00> : vector<2x128xf32>
    %91 = tpu.matmul %87, %12, %cst_25 {dimension_numbers = #tpu.dot_dimension_numbers<[1], [0], [0], [1], [0, 0, 1, 1], [], []>} : vector<2x32xf32>, vector<32x128xf32>, vector<2x128xf32> -> vector<2x128xf32>
    %92 = arith.addf %90, %91 : vector<2x128xf32>
    %93 = vector.extract_strided_slice %92 {offsets = [0, 0], sizes = [2, 32], strides = [1, 1]} : vector<2x128xf32> to vector<2x32xf32>
    %94 = arith.negf %93 : vector<2x32xf32>
    %95 = math.exp %94 : vector<2x32xf32>
    %cst_26 = arith.constant 1.000000e+00 : f32
    %96 = vector.broadcast %cst_26 : f32 to vector<2x32xf32>
    %97 = arith.addf %96, %95 : vector<2x32xf32>
    %98 = arith.divf %96, %97 : vector<2x32xf32>
    %99 = vector.extract_strided_slice %92 {offsets = [0, 32], sizes = [2, 32], strides = [1, 1]} : vector<2x128xf32> to vector<2x32xf32>
    %100 = arith.negf %99 : vector<2x32xf32>
    %101 = math.exp %100 : vector<2x32xf32>
    %cst_27 = arith.constant 1.000000e+00 : f32
    %102 = vector.broadcast %cst_27 : f32 to vector<2x32xf32>
    %103 = arith.addf %102, %101 : vector<2x32xf32>
    %104 = arith.divf %102, %103 : vector<2x32xf32>
    %105 = vector.extract_strided_slice %92 {offsets = [0, 64], sizes = [2, 32], strides = [1, 1]} : vector<2x128xf32> to vector<2x32xf32>
    %106 = math.tanh %105 : vector<2x32xf32>
    %107 = vector.extract_strided_slice %92 {offsets = [0, 96], sizes = [2, 32], strides = [1, 1]} : vector<2x128xf32> to vector<2x32xf32>
    %108 = arith.negf %107 : vector<2x32xf32>
    %109 = math.exp %108 : vector<2x32xf32>
    %cst_28 = arith.constant 1.000000e+00 : f32
    %110 = vector.broadcast %cst_28 : f32 to vector<2x32xf32>
    %111 = arith.addf %110, %109 : vector<2x32xf32>
    %112 = arith.divf %110, %111 : vector<2x32xf32>
    %113 = arith.mulf %104, %85 : vector<2x32xf32>
    %114 = arith.mulf %98, %106 : vector<2x32xf32>
    %115 = arith.addf %113, %114 : vector<2x32xf32>
    %116 = math.tanh %115 : vector<2x32xf32>
    %117 = arith.mulf %112, %116 : vector<2x32xf32>
    %118 = vector.extract_strided_slice %21 {offsets = [6, 0], sizes = [2, 128], strides = [1, 1]} : vector<16x128xf32> to vector<2x128xf32>
    %119 = vector.extract_strided_slice %25 {offsets = [8, 0], sizes = [2, 128], strides = [1, 1]} : vector<16x128xf32> to vector<2x128xf32>
    %120 = arith.addf %118, %119 : vector<2x128xf32>
    %cst_29 = arith.constant dense<0.000000e+00> : vector<2x128xf32>
    %121 = tpu.matmul %117, %12, %cst_29 {dimension_numbers = #tpu.dot_dimension_numbers<[1], [0], [0], [1], [0, 0, 1, 1], [], []>} : vector<2x32xf32>, vector<32x128xf32>, vector<2x128xf32> -> vector<2x128xf32>
    %122 = arith.addf %120, %121 : vector<2x128xf32>
    %123 = vector.extract_strided_slice %122 {offsets = [0, 0], sizes = [2, 32], strides = [1, 1]} : vector<2x128xf32> to vector<2x32xf32>
    %124 = arith.negf %123 : vector<2x32xf32>
    %125 = math.exp %124 : vector<2x32xf32>
    %cst_30 = arith.constant 1.000000e+00 : f32
    %126 = vector.broadcast %cst_30 : f32 to vector<2x32xf32>
    %127 = arith.addf %126, %125 : vector<2x32xf32>
    %128 = arith.divf %126, %127 : vector<2x32xf32>
    %129 = vector.extract_strided_slice %122 {offsets = [0, 32], sizes = [2, 32], strides = [1, 1]} : vector<2x128xf32> to vector<2x32xf32>
    %130 = arith.negf %129 : vector<2x32xf32>
    %131 = math.exp %130 : vector<2x32xf32>
    %cst_31 = arith.constant 1.000000e+00 : f32
    %132 = vector.broadcast %cst_31 : f32 to vector<2x32xf32>
    %133 = arith.addf %132, %131 : vector<2x32xf32>
    %134 = arith.divf %132, %133 : vector<2x32xf32>
    %135 = vector.extract_strided_slice %122 {offsets = [0, 64], sizes = [2, 32], strides = [1, 1]} : vector<2x128xf32> to vector<2x32xf32>
    %136 = math.tanh %135 : vector<2x32xf32>
    %137 = vector.extract_strided_slice %122 {offsets = [0, 96], sizes = [2, 32], strides = [1, 1]} : vector<2x128xf32> to vector<2x32xf32>
    %138 = arith.negf %137 : vector<2x32xf32>
    %139 = math.exp %138 : vector<2x32xf32>
    %cst_32 = arith.constant 1.000000e+00 : f32
    %140 = vector.broadcast %cst_32 : f32 to vector<2x32xf32>
    %141 = arith.addf %140, %139 : vector<2x32xf32>
    %142 = arith.divf %140, %141 : vector<2x32xf32>
    %143 = arith.mulf %134, %115 : vector<2x32xf32>
    %144 = arith.mulf %128, %136 : vector<2x32xf32>
    %145 = arith.addf %143, %144 : vector<2x32xf32>
    %146 = math.tanh %145 : vector<2x32xf32>
    %147 = arith.mulf %142, %146 : vector<2x32xf32>
    %148 = vector.extract_strided_slice %21 {offsets = [8, 0], sizes = [2, 128], strides = [1, 1]} : vector<16x128xf32> to vector<2x128xf32>
    %149 = vector.extract_strided_slice %25 {offsets = [6, 0], sizes = [2, 128], strides = [1, 1]} : vector<16x128xf32> to vector<2x128xf32>
    %150 = arith.addf %148, %149 : vector<2x128xf32>
    %cst_33 = arith.constant dense<0.000000e+00> : vector<2x128xf32>
    %151 = tpu.matmul %147, %12, %cst_33 {dimension_numbers = #tpu.dot_dimension_numbers<[1], [0], [0], [1], [0, 0, 1, 1], [], []>} : vector<2x32xf32>, vector<32x128xf32>, vector<2x128xf32> -> vector<2x128xf32>
    %152 = arith.addf %150, %151 : vector<2x128xf32>
    %153 = vector.extract_strided_slice %152 {offsets = [0, 0], sizes = [2, 32], strides = [1, 1]} : vector<2x128xf32> to vector<2x32xf32>
    %154 = arith.negf %153 : vector<2x32xf32>
    %155 = math.exp %154 : vector<2x32xf32>
    %cst_34 = arith.constant 1.000000e+00 : f32
    %156 = vector.broadcast %cst_34 : f32 to vector<2x32xf32>
    %157 = arith.addf %156, %155 : vector<2x32xf32>
    %158 = arith.divf %156, %157 : vector<2x32xf32>
    %159 = vector.extract_strided_slice %152 {offsets = [0, 32], sizes = [2, 32], strides = [1, 1]} : vector<2x128xf32> to vector<2x32xf32>
    %160 = arith.negf %159 : vector<2x32xf32>
    %161 = math.exp %160 : vector<2x32xf32>
    %cst_35 = arith.constant 1.000000e+00 : f32
    %162 = vector.broadcast %cst_35 : f32 to vector<2x32xf32>
    %163 = arith.addf %162, %161 : vector<2x32xf32>
    %164 = arith.divf %162, %163 : vector<2x32xf32>
    %165 = vector.extract_strided_slice %152 {offsets = [0, 64], sizes = [2, 32], strides = [1, 1]} : vector<2x128xf32> to vector<2x32xf32>
    %166 = math.tanh %165 : vector<2x32xf32>
    %167 = vector.extract_strided_slice %152 {offsets = [0, 96], sizes = [2, 32], strides = [1, 1]} : vector<2x128xf32> to vector<2x32xf32>
    %168 = arith.negf %167 : vector<2x32xf32>
    %169 = math.exp %168 : vector<2x32xf32>
    %cst_36 = arith.constant 1.000000e+00 : f32
    %170 = vector.broadcast %cst_36 : f32 to vector<2x32xf32>
    %171 = arith.addf %170, %169 : vector<2x32xf32>
    %172 = arith.divf %170, %171 : vector<2x32xf32>
    %173 = arith.mulf %164, %145 : vector<2x32xf32>
    %174 = arith.mulf %158, %166 : vector<2x32xf32>
    %175 = arith.addf %173, %174 : vector<2x32xf32>
    %176 = math.tanh %175 : vector<2x32xf32>
    %177 = arith.mulf %172, %176 : vector<2x32xf32>
    %178 = vector.extract_strided_slice %21 {offsets = [10, 0], sizes = [2, 128], strides = [1, 1]} : vector<16x128xf32> to vector<2x128xf32>
    %179 = vector.extract_strided_slice %25 {offsets = [4, 0], sizes = [2, 128], strides = [1, 1]} : vector<16x128xf32> to vector<2x128xf32>
    %180 = arith.addf %178, %179 : vector<2x128xf32>
    %cst_37 = arith.constant dense<0.000000e+00> : vector<2x128xf32>
    %181 = tpu.matmul %177, %12, %cst_37 {dimension_numbers = #tpu.dot_dimension_numbers<[1], [0], [0], [1], [0, 0, 1, 1], [], []>} : vector<2x32xf32>, vector<32x128xf32>, vector<2x128xf32> -> vector<2x128xf32>
    %182 = arith.addf %180, %181 : vector<2x128xf32>
    %183 = vector.extract_strided_slice %182 {offsets = [0, 0], sizes = [2, 32], strides = [1, 1]} : vector<2x128xf32> to vector<2x32xf32>
    %184 = arith.negf %183 : vector<2x32xf32>
    %185 = math.exp %184 : vector<2x32xf32>
    %cst_38 = arith.constant 1.000000e+00 : f32
    %186 = vector.broadcast %cst_38 : f32 to vector<2x32xf32>
    %187 = arith.addf %186, %185 : vector<2x32xf32>
    %188 = arith.divf %186, %187 : vector<2x32xf32>
    %189 = vector.extract_strided_slice %182 {offsets = [0, 32], sizes = [2, 32], strides = [1, 1]} : vector<2x128xf32> to vector<2x32xf32>
    %190 = arith.negf %189 : vector<2x32xf32>
    %191 = math.exp %190 : vector<2x32xf32>
    %cst_39 = arith.constant 1.000000e+00 : f32
    %192 = vector.broadcast %cst_39 : f32 to vector<2x32xf32>
    %193 = arith.addf %192, %191 : vector<2x32xf32>
    %194 = arith.divf %192, %193 : vector<2x32xf32>
    %195 = vector.extract_strided_slice %182 {offsets = [0, 64], sizes = [2, 32], strides = [1, 1]} : vector<2x128xf32> to vector<2x32xf32>
    %196 = math.tanh %195 : vector<2x32xf32>
    %197 = vector.extract_strided_slice %182 {offsets = [0, 96], sizes = [2, 32], strides = [1, 1]} : vector<2x128xf32> to vector<2x32xf32>
    %198 = arith.negf %197 : vector<2x32xf32>
    %199 = math.exp %198 : vector<2x32xf32>
    %cst_40 = arith.constant 1.000000e+00 : f32
    %200 = vector.broadcast %cst_40 : f32 to vector<2x32xf32>
    %201 = arith.addf %200, %199 : vector<2x32xf32>
    %202 = arith.divf %200, %201 : vector<2x32xf32>
    %203 = arith.mulf %194, %175 : vector<2x32xf32>
    %204 = arith.mulf %188, %196 : vector<2x32xf32>
    %205 = arith.addf %203, %204 : vector<2x32xf32>
    %206 = math.tanh %205 : vector<2x32xf32>
    %207 = arith.mulf %202, %206 : vector<2x32xf32>
    %208 = vector.extract_strided_slice %21 {offsets = [12, 0], sizes = [2, 128], strides = [1, 1]} : vector<16x128xf32> to vector<2x128xf32>
    %209 = vector.extract_strided_slice %25 {offsets = [2, 0], sizes = [2, 128], strides = [1, 1]} : vector<16x128xf32> to vector<2x128xf32>
    %210 = arith.addf %208, %209 : vector<2x128xf32>
    %cst_41 = arith.constant dense<0.000000e+00> : vector<2x128xf32>
    %211 = tpu.matmul %207, %12, %cst_41 {dimension_numbers = #tpu.dot_dimension_numbers<[1], [0], [0], [1], [0, 0, 1, 1], [], []>} : vector<2x32xf32>, vector<32x128xf32>, vector<2x128xf32> -> vector<2x128xf32>
    %212 = arith.addf %210, %211 : vector<2x128xf32>
    %213 = vector.extract_strided_slice %212 {offsets = [0, 0], sizes = [2, 32], strides = [1, 1]} : vector<2x128xf32> to vector<2x32xf32>
    %214 = arith.negf %213 : vector<2x32xf32>
    %215 = math.exp %214 : vector<2x32xf32>
    %cst_42 = arith.constant 1.000000e+00 : f32
    %216 = vector.broadcast %cst_42 : f32 to vector<2x32xf32>
    %217 = arith.addf %216, %215 : vector<2x32xf32>
    %218 = arith.divf %216, %217 : vector<2x32xf32>
    %219 = vector.extract_strided_slice %212 {offsets = [0, 32], sizes = [2, 32], strides = [1, 1]} : vector<2x128xf32> to vector<2x32xf32>
    %220 = arith.negf %219 : vector<2x32xf32>
    %221 = math.exp %220 : vector<2x32xf32>
    %cst_43 = arith.constant 1.000000e+00 : f32
    %222 = vector.broadcast %cst_43 : f32 to vector<2x32xf32>
    %223 = arith.addf %222, %221 : vector<2x32xf32>
    %224 = arith.divf %222, %223 : vector<2x32xf32>
    %225 = vector.extract_strided_slice %212 {offsets = [0, 64], sizes = [2, 32], strides = [1, 1]} : vector<2x128xf32> to vector<2x32xf32>
    %226 = math.tanh %225 : vector<2x32xf32>
    %227 = vector.extract_strided_slice %212 {offsets = [0, 96], sizes = [2, 32], strides = [1, 1]} : vector<2x128xf32> to vector<2x32xf32>
    %228 = arith.negf %227 : vector<2x32xf32>
    %229 = math.exp %228 : vector<2x32xf32>
    %cst_44 = arith.constant 1.000000e+00 : f32
    %230 = vector.broadcast %cst_44 : f32 to vector<2x32xf32>
    %231 = arith.addf %230, %229 : vector<2x32xf32>
    %232 = arith.divf %230, %231 : vector<2x32xf32>
    %233 = arith.mulf %224, %205 : vector<2x32xf32>
    %234 = arith.mulf %218, %226 : vector<2x32xf32>
    %235 = arith.addf %233, %234 : vector<2x32xf32>
    %236 = math.tanh %235 : vector<2x32xf32>
    %237 = arith.mulf %232, %236 : vector<2x32xf32>
    %238 = vector.extract_strided_slice %21 {offsets = [14, 0], sizes = [2, 128], strides = [1, 1]} : vector<16x128xf32> to vector<2x128xf32>
    %239 = vector.extract_strided_slice %25 {offsets = [0, 0], sizes = [2, 128], strides = [1, 1]} : vector<16x128xf32> to vector<2x128xf32>
    %240 = arith.addf %238, %239 : vector<2x128xf32>
    %cst_45 = arith.constant dense<0.000000e+00> : vector<2x128xf32>
    %241 = tpu.matmul %237, %12, %cst_45 {dimension_numbers = #tpu.dot_dimension_numbers<[1], [0], [0], [1], [0, 0, 1, 1], [], []>} : vector<2x32xf32>, vector<32x128xf32>, vector<2x128xf32> -> vector<2x128xf32>
    %242 = arith.addf %240, %241 : vector<2x128xf32>
    %243 = vector.extract_strided_slice %242 {offsets = [0, 0], sizes = [2, 32], strides = [1, 1]} : vector<2x128xf32> to vector<2x32xf32>
    %244 = arith.negf %243 : vector<2x32xf32>
    %245 = math.exp %244 : vector<2x32xf32>
    %cst_46 = arith.constant 1.000000e+00 : f32
    %246 = vector.broadcast %cst_46 : f32 to vector<2x32xf32>
    %247 = arith.addf %246, %245 : vector<2x32xf32>
    %248 = arith.divf %246, %247 : vector<2x32xf32>
    %249 = vector.extract_strided_slice %242 {offsets = [0, 32], sizes = [2, 32], strides = [1, 1]} : vector<2x128xf32> to vector<2x32xf32>
    %250 = arith.negf %249 : vector<2x32xf32>
    %251 = math.exp %250 : vector<2x32xf32>
    %cst_47 = arith.constant 1.000000e+00 : f32
    %252 = vector.broadcast %cst_47 : f32 to vector<2x32xf32>
    %253 = arith.addf %252, %251 : vector<2x32xf32>
    %254 = arith.divf %252, %253 : vector<2x32xf32>
    %255 = vector.extract_strided_slice %242 {offsets = [0, 64], sizes = [2, 32], strides = [1, 1]} : vector<2x128xf32> to vector<2x32xf32>
    %256 = math.tanh %255 : vector<2x32xf32>
    %257 = vector.extract_strided_slice %242 {offsets = [0, 96], sizes = [2, 32], strides = [1, 1]} : vector<2x128xf32> to vector<2x32xf32>
    %258 = arith.negf %257 : vector<2x32xf32>
    %259 = math.exp %258 : vector<2x32xf32>
    %cst_48 = arith.constant 1.000000e+00 : f32
    %260 = vector.broadcast %cst_48 : f32 to vector<2x32xf32>
    %261 = arith.addf %260, %259 : vector<2x32xf32>
    %262 = arith.divf %260, %261 : vector<2x32xf32>
    %263 = arith.mulf %254, %235 : vector<2x32xf32>
    %264 = arith.mulf %248, %256 : vector<2x32xf32>
    %265 = arith.addf %263, %264 : vector<2x32xf32>
    %266 = math.tanh %265 : vector<2x32xf32>
    %267 = arith.mulf %262, %266 : vector<2x32xf32>
    %268 = vector.extract_strided_slice %57 {offsets = [0, 0], sizes = [2, 16], strides = [1, 1]} : vector<2x32xf32> to vector<2x16xf32>
    %269 = vector.extract_strided_slice %267 {offsets = [0, 16], sizes = [2, 16], strides = [1, 1]} : vector<2x32xf32> to vector<2x16xf32>
    %270 = tpu.concatenate %268, %269 in 1 : vector<2x16xf32>, vector<2x16xf32> -> vector<2x32xf32>
    %271 = vector.extract_strided_slice %87 {offsets = [0, 0], sizes = [2, 16], strides = [1, 1]} : vector<2x32xf32> to vector<2x16xf32>
    %272 = vector.extract_strided_slice %237 {offsets = [0, 16], sizes = [2, 16], strides = [1, 1]} : vector<2x32xf32> to vector<2x16xf32>
    %273 = tpu.concatenate %271, %272 in 1 : vector<2x16xf32>, vector<2x16xf32> -> vector<2x32xf32>
    %274 = vector.extract_strided_slice %117 {offsets = [0, 0], sizes = [2, 16], strides = [1, 1]} : vector<2x32xf32> to vector<2x16xf32>
    %275 = vector.extract_strided_slice %207 {offsets = [0, 16], sizes = [2, 16], strides = [1, 1]} : vector<2x32xf32> to vector<2x16xf32>
    %276 = tpu.concatenate %274, %275 in 1 : vector<2x16xf32>, vector<2x16xf32> -> vector<2x32xf32>
    %277 = vector.extract_strided_slice %147 {offsets = [0, 0], sizes = [2, 16], strides = [1, 1]} : vector<2x32xf32> to vector<2x16xf32>
    %278 = vector.extract_strided_slice %177 {offsets = [0, 16], sizes = [2, 16], strides = [1, 1]} : vector<2x32xf32> to vector<2x16xf32>
    %279 = tpu.concatenate %277, %278 in 1 : vector<2x16xf32>, vector<2x16xf32> -> vector<2x32xf32>
    %280 = vector.extract_strided_slice %177 {offsets = [0, 0], sizes = [2, 16], strides = [1, 1]} : vector<2x32xf32> to vector<2x16xf32>
    %281 = vector.extract_strided_slice %147 {offsets = [0, 16], sizes = [2, 16], strides = [1, 1]} : vector<2x32xf32> to vector<2x16xf32>
    %282 = tpu.concatenate %280, %281 in 1 : vector<2x16xf32>, vector<2x16xf32> -> vector<2x32xf32>
    %283 = vector.extract_strided_slice %207 {offsets = [0, 0], sizes = [2, 16], strides = [1, 1]} : vector<2x32xf32> to vector<2x16xf32>
    %284 = vector.extract_strided_slice %117 {offsets = [0, 16], sizes = [2, 16], strides = [1, 1]} : vector<2x32xf32> to vector<2x16xf32>
    %285 = tpu.concatenate %283, %284 in 1 : vector<2x16xf32>, vector<2x16xf32> -> vector<2x32xf32>
    %286 = vector.extract_strided_slice %237 {offsets = [0, 0], sizes = [2, 16], strides = [1, 1]} : vector<2x32xf32> to vector<2x16xf32>
    %287 = vector.extract_strided_slice %87 {offsets = [0, 16], sizes = [2, 16], strides = [1, 1]} : vector<2x32xf32> to vector<2x16xf32>
    %288 = tpu.concatenate %286, %287 in 1 : vector<2x16xf32>, vector<2x16xf32> -> vector<2x32xf32>
    %289 = vector.extract_strided_slice %267 {offsets = [0, 0], sizes = [2, 16], strides = [1, 1]} : vector<2x32xf32> to vector<2x16xf32>
    %290 = vector.extract_strided_slice %57 {offsets = [0, 16], sizes = [2, 16], strides = [1, 1]} : vector<2x32xf32> to vector<2x16xf32>
    %291 = tpu.concatenate %289, %290 in 1 : vector<2x16xf32>, vector<2x16xf32> -> vector<2x32xf32>
    %c0_49 = arith.constant 0 : index
    %c0_50 = arith.constant 0 : index
    %292 = vector.load %arg8[%c0_49, %c0_50] : memref<16x64xf32, #tpu.memory_space<vmem>>, vector<16x64xf32>
    %293 = tpu.iota {dimensions = array<i32: 1>} : vector<1x64xi32>
    %c15_i32 = arith.constant 15 : i32
    %294 = vector.broadcast %c15_i32 : i32 to vector<1x64xi32>
    %295 = arith.andi %293, %294 : vector<1x64xi32>
    %c8_i32 = arith.constant 8 : i32
    %296 = vector.broadcast %c8_i32 : i32 to vector<1x64xi32>
    %297 = arith.cmpi slt, %295, %296 : vector<1x64xi32>
    %298 = arith.extui %297 : vector<1x64xi1> to vector<1x64xi32>
    %299 = arith.sitofp %298 : vector<1x64xi32> to vector<1x64xf32>
    %300 = vector.broadcast %299 : vector<1x64xf32> to vector<16x64xf32>
    %301 = arith.mulf %11, %300 : vector<16x64xf32>
    %cst_51 = arith.constant 1.000000e+00 : f32
    %302 = vector.broadcast %cst_51 : f32 to vector<1x64xf32>
    %303 = arith.subf %302, %299 : vector<1x64xf32>
    %304 = vector.broadcast %303 : vector<1x64xf32> to vector<16x64xf32>
    %305 = arith.mulf %11, %304 : vector<16x64xf32>
    %cst_52 = arith.constant 0.000000e+00 : f32
    %306 = vector.broadcast %cst_52 : f32 to vector<2x16xf32>
    %cst_53 = arith.constant 0.000000e+00 : f32
    %307 = vector.broadcast %cst_53 : f32 to vector<2x16xf32>
    %308 = vector.extract_strided_slice %301 {offsets = [0, 0], sizes = [2, 64], strides = [1, 1]} : vector<16x64xf32> to vector<2x64xf32>
    %309 = vector.extract_strided_slice %305 {offsets = [14, 0], sizes = [2, 64], strides = [1, 1]} : vector<16x64xf32> to vector<2x64xf32>
    %310 = arith.addf %308, %309 : vector<2x64xf32>
    %cst_54 = arith.constant dense<0.000000e+00> : vector<2x64xf32>
    %311 = tpu.matmul %306, %292, %cst_54 {dimension_numbers = #tpu.dot_dimension_numbers<[1], [0], [0], [1], [0, 0, 1, 1], [], []>} : vector<2x16xf32>, vector<16x64xf32>, vector<2x64xf32> -> vector<2x64xf32>
    %312 = arith.addf %310, %311 : vector<2x64xf32>
    %313 = vector.extract_strided_slice %312 {offsets = [0, 0], sizes = [2, 16], strides = [1, 1]} : vector<2x64xf32> to vector<2x16xf32>
    %314 = arith.negf %313 : vector<2x16xf32>
    %315 = math.exp %314 : vector<2x16xf32>
    %cst_55 = arith.constant 1.000000e+00 : f32
    %316 = vector.broadcast %cst_55 : f32 to vector<2x16xf32>
    %317 = arith.addf %316, %315 : vector<2x16xf32>
    %318 = arith.divf %316, %317 : vector<2x16xf32>
    %319 = vector.extract_strided_slice %312 {offsets = [0, 16], sizes = [2, 16], strides = [1, 1]} : vector<2x64xf32> to vector<2x16xf32>
    %320 = arith.negf %319 : vector<2x16xf32>
    %321 = math.exp %320 : vector<2x16xf32>
    %cst_56 = arith.constant 1.000000e+00 : f32
    %322 = vector.broadcast %cst_56 : f32 to vector<2x16xf32>
    %323 = arith.addf %322, %321 : vector<2x16xf32>
    %324 = arith.divf %322, %323 : vector<2x16xf32>
    %325 = vector.extract_strided_slice %312 {offsets = [0, 32], sizes = [2, 16], strides = [1, 1]} : vector<2x64xf32> to vector<2x16xf32>
    %326 = math.tanh %325 : vector<2x16xf32>
    %327 = vector.extract_strided_slice %312 {offsets = [0, 48], sizes = [2, 16], strides = [1, 1]} : vector<2x64xf32> to vector<2x16xf32>
    %328 = arith.negf %327 : vector<2x16xf32>
    %329 = math.exp %328 : vector<2x16xf32>
    %cst_57 = arith.constant 1.000000e+00 : f32
    %330 = vector.broadcast %cst_57 : f32 to vector<2x16xf32>
    %331 = arith.addf %330, %329 : vector<2x16xf32>
    %332 = arith.divf %330, %331 : vector<2x16xf32>
    %333 = arith.mulf %324, %307 : vector<2x16xf32>
    %334 = arith.mulf %318, %326 : vector<2x16xf32>
    %335 = arith.addf %333, %334 : vector<2x16xf32>
    %336 = math.tanh %335 : vector<2x16xf32>
    %337 = arith.mulf %332, %336 : vector<2x16xf32>
    %338 = vector.extract_strided_slice %301 {offsets = [2, 0], sizes = [2, 64], strides = [1, 1]} : vector<16x64xf32> to vector<2x64xf32>
    %339 = vector.extract_strided_slice %305 {offsets = [12, 0], sizes = [2, 64], strides = [1, 1]} : vector<16x64xf32> to vector<2x64xf32>
    %340 = arith.addf %338, %339 : vector<2x64xf32>
    %cst_58 = arith.constant dense<0.000000e+00> : vector<2x64xf32>
    %341 = tpu.matmul %337, %292, %cst_58 {dimension_numbers = #tpu.dot_dimension_numbers<[1], [0], [0], [1], [0, 0, 1, 1], [], []>} : vector<2x16xf32>, vector<16x64xf32>, vector<2x64xf32> -> vector<2x64xf32>
    %342 = arith.addf %340, %341 : vector<2x64xf32>
    %343 = vector.extract_strided_slice %342 {offsets = [0, 0], sizes = [2, 16], strides = [1, 1]} : vector<2x64xf32> to vector<2x16xf32>
    %344 = arith.negf %343 : vector<2x16xf32>
    %345 = math.exp %344 : vector<2x16xf32>
    %cst_59 = arith.constant 1.000000e+00 : f32
    %346 = vector.broadcast %cst_59 : f32 to vector<2x16xf32>
    %347 = arith.addf %346, %345 : vector<2x16xf32>
    %348 = arith.divf %346, %347 : vector<2x16xf32>
    %349 = vector.extract_strided_slice %342 {offsets = [0, 16], sizes = [2, 16], strides = [1, 1]} : vector<2x64xf32> to vector<2x16xf32>
    %350 = arith.negf %349 : vector<2x16xf32>
    %351 = math.exp %350 : vector<2x16xf32>
    %cst_60 = arith.constant 1.000000e+00 : f32
    %352 = vector.broadcast %cst_60 : f32 to vector<2x16xf32>
    %353 = arith.addf %352, %351 : vector<2x16xf32>
    %354 = arith.divf %352, %353 : vector<2x16xf32>
    %355 = vector.extract_strided_slice %342 {offsets = [0, 32], sizes = [2, 16], strides = [1, 1]} : vector<2x64xf32> to vector<2x16xf32>
    %356 = math.tanh %355 : vector<2x16xf32>
    %357 = vector.extract_strided_slice %342 {offsets = [0, 48], sizes = [2, 16], strides = [1, 1]} : vector<2x64xf32> to vector<2x16xf32>
    %358 = arith.negf %357 : vector<2x16xf32>
    %359 = math.exp %358 : vector<2x16xf32>
    %cst_61 = arith.constant 1.000000e+00 : f32
    %360 = vector.broadcast %cst_61 : f32 to vector<2x16xf32>
    %361 = arith.addf %360, %359 : vector<2x16xf32>
    %362 = arith.divf %360, %361 : vector<2x16xf32>
    %363 = arith.mulf %354, %335 : vector<2x16xf32>
    %364 = arith.mulf %348, %356 : vector<2x16xf32>
    %365 = arith.addf %363, %364 : vector<2x16xf32>
    %366 = math.tanh %365 : vector<2x16xf32>
    %367 = arith.mulf %362, %366 : vector<2x16xf32>
    %368 = vector.extract_strided_slice %301 {offsets = [4, 0], sizes = [2, 64], strides = [1, 1]} : vector<16x64xf32> to vector<2x64xf32>
    %369 = vector.extract_strided_slice %305 {offsets = [10, 0], sizes = [2, 64], strides = [1, 1]} : vector<16x64xf32> to vector<2x64xf32>
    %370 = arith.addf %368, %369 : vector<2x64xf32>
    %cst_62 = arith.constant dense<0.000000e+00> : vector<2x64xf32>
    %371 = tpu.matmul %367, %292, %cst_62 {dimension_numbers = #tpu.dot_dimension_numbers<[1], [0], [0], [1], [0, 0, 1, 1], [], []>} : vector<2x16xf32>, vector<16x64xf32>, vector<2x64xf32> -> vector<2x64xf32>
    %372 = arith.addf %370, %371 : vector<2x64xf32>
    %373 = vector.extract_strided_slice %372 {offsets = [0, 0], sizes = [2, 16], strides = [1, 1]} : vector<2x64xf32> to vector<2x16xf32>
    %374 = arith.negf %373 : vector<2x16xf32>
    %375 = math.exp %374 : vector<2x16xf32>
    %cst_63 = arith.constant 1.000000e+00 : f32
    %376 = vector.broadcast %cst_63 : f32 to vector<2x16xf32>
    %377 = arith.addf %376, %375 : vector<2x16xf32>
    %378 = arith.divf %376, %377 : vector<2x16xf32>
    %379 = vector.extract_strided_slice %372 {offsets = [0, 16], sizes = [2, 16], strides = [1, 1]} : vector<2x64xf32> to vector<2x16xf32>
    %380 = arith.negf %379 : vector<2x16xf32>
    %381 = math.exp %380 : vector<2x16xf32>
    %cst_64 = arith.constant 1.000000e+00 : f32
    %382 = vector.broadcast %cst_64 : f32 to vector<2x16xf32>
    %383 = arith.addf %382, %381 : vector<2x16xf32>
    %384 = arith.divf %382, %383 : vector<2x16xf32>
    %385 = vector.extract_strided_slice %372 {offsets = [0, 32], sizes = [2, 16], strides = [1, 1]} : vector<2x64xf32> to vector<2x16xf32>
    %386 = math.tanh %385 : vector<2x16xf32>
    %387 = vector.extract_strided_slice %372 {offsets = [0, 48], sizes = [2, 16], strides = [1, 1]} : vector<2x64xf32> to vector<2x16xf32>
    %388 = arith.negf %387 : vector<2x16xf32>
    %389 = math.exp %388 : vector<2x16xf32>
    %cst_65 = arith.constant 1.000000e+00 : f32
    %390 = vector.broadcast %cst_65 : f32 to vector<2x16xf32>
    %391 = arith.addf %390, %389 : vector<2x16xf32>
    %392 = arith.divf %390, %391 : vector<2x16xf32>
    %393 = arith.mulf %384, %365 : vector<2x16xf32>
    %394 = arith.mulf %378, %386 : vector<2x16xf32>
    %395 = arith.addf %393, %394 : vector<2x16xf32>
    %396 = math.tanh %395 : vector<2x16xf32>
    %397 = arith.mulf %392, %396 : vector<2x16xf32>
    %398 = vector.extract_strided_slice %301 {offsets = [6, 0], sizes = [2, 64], strides = [1, 1]} : vector<16x64xf32> to vector<2x64xf32>
    %399 = vector.extract_strided_slice %305 {offsets = [8, 0], sizes = [2, 64], strides = [1, 1]} : vector<16x64xf32> to vector<2x64xf32>
    %400 = arith.addf %398, %399 : vector<2x64xf32>
    %cst_66 = arith.constant dense<0.000000e+00> : vector<2x64xf32>
    %401 = tpu.matmul %397, %292, %cst_66 {dimension_numbers = #tpu.dot_dimension_numbers<[1], [0], [0], [1], [0, 0, 1, 1], [], []>} : vector<2x16xf32>, vector<16x64xf32>, vector<2x64xf32> -> vector<2x64xf32>
    %402 = arith.addf %400, %401 : vector<2x64xf32>
    %403 = vector.extract_strided_slice %402 {offsets = [0, 0], sizes = [2, 16], strides = [1, 1]} : vector<2x64xf32> to vector<2x16xf32>
    %404 = arith.negf %403 : vector<2x16xf32>
    %405 = math.exp %404 : vector<2x16xf32>
    %cst_67 = arith.constant 1.000000e+00 : f32
    %406 = vector.broadcast %cst_67 : f32 to vector<2x16xf32>
    %407 = arith.addf %406, %405 : vector<2x16xf32>
    %408 = arith.divf %406, %407 : vector<2x16xf32>
    %409 = vector.extract_strided_slice %402 {offsets = [0, 16], sizes = [2, 16], strides = [1, 1]} : vector<2x64xf32> to vector<2x16xf32>
    %410 = arith.negf %409 : vector<2x16xf32>
    %411 = math.exp %410 : vector<2x16xf32>
    %cst_68 = arith.constant 1.000000e+00 : f32
    %412 = vector.broadcast %cst_68 : f32 to vector<2x16xf32>
    %413 = arith.addf %412, %411 : vector<2x16xf32>
    %414 = arith.divf %412, %413 : vector<2x16xf32>
    %415 = vector.extract_strided_slice %402 {offsets = [0, 32], sizes = [2, 16], strides = [1, 1]} : vector<2x64xf32> to vector<2x16xf32>
    %416 = math.tanh %415 : vector<2x16xf32>
    %417 = vector.extract_strided_slice %402 {offsets = [0, 48], sizes = [2, 16], strides = [1, 1]} : vector<2x64xf32> to vector<2x16xf32>
    %418 = arith.negf %417 : vector<2x16xf32>
    %419 = math.exp %418 : vector<2x16xf32>
    %cst_69 = arith.constant 1.000000e+00 : f32
    %420 = vector.broadcast %cst_69 : f32 to vector<2x16xf32>
    %421 = arith.addf %420, %419 : vector<2x16xf32>
    %422 = arith.divf %420, %421 : vector<2x16xf32>
    %423 = arith.mulf %414, %395 : vector<2x16xf32>
    %424 = arith.mulf %408, %416 : vector<2x16xf32>
    %425 = arith.addf %423, %424 : vector<2x16xf32>
    %426 = math.tanh %425 : vector<2x16xf32>
    %427 = arith.mulf %422, %426 : vector<2x16xf32>
    %428 = vector.extract_strided_slice %301 {offsets = [8, 0], sizes = [2, 64], strides = [1, 1]} : vector<16x64xf32> to vector<2x64xf32>
    %429 = vector.extract_strided_slice %305 {offsets = [6, 0], sizes = [2, 64], strides = [1, 1]} : vector<16x64xf32> to vector<2x64xf32>
    %430 = arith.addf %428, %429 : vector<2x64xf32>
    %cst_70 = arith.constant dense<0.000000e+00> : vector<2x64xf32>
    %431 = tpu.matmul %427, %292, %cst_70 {dimension_numbers = #tpu.dot_dimension_numbers<[1], [0], [0], [1], [0, 0, 1, 1], [], []>} : vector<2x16xf32>, vector<16x64xf32>, vector<2x64xf32> -> vector<2x64xf32>
    %432 = arith.addf %430, %431 : vector<2x64xf32>
    %433 = vector.extract_strided_slice %432 {offsets = [0, 0], sizes = [2, 16], strides = [1, 1]} : vector<2x64xf32> to vector<2x16xf32>
    %434 = arith.negf %433 : vector<2x16xf32>
    %435 = math.exp %434 : vector<2x16xf32>
    %cst_71 = arith.constant 1.000000e+00 : f32
    %436 = vector.broadcast %cst_71 : f32 to vector<2x16xf32>
    %437 = arith.addf %436, %435 : vector<2x16xf32>
    %438 = arith.divf %436, %437 : vector<2x16xf32>
    %439 = vector.extract_strided_slice %432 {offsets = [0, 16], sizes = [2, 16], strides = [1, 1]} : vector<2x64xf32> to vector<2x16xf32>
    %440 = arith.negf %439 : vector<2x16xf32>
    %441 = math.exp %440 : vector<2x16xf32>
    %cst_72 = arith.constant 1.000000e+00 : f32
    %442 = vector.broadcast %cst_72 : f32 to vector<2x16xf32>
    %443 = arith.addf %442, %441 : vector<2x16xf32>
    %444 = arith.divf %442, %443 : vector<2x16xf32>
    %445 = vector.extract_strided_slice %432 {offsets = [0, 32], sizes = [2, 16], strides = [1, 1]} : vector<2x64xf32> to vector<2x16xf32>
    %446 = math.tanh %445 : vector<2x16xf32>
    %447 = vector.extract_strided_slice %432 {offsets = [0, 48], sizes = [2, 16], strides = [1, 1]} : vector<2x64xf32> to vector<2x16xf32>
    %448 = arith.negf %447 : vector<2x16xf32>
    %449 = math.exp %448 : vector<2x16xf32>
    %cst_73 = arith.constant 1.000000e+00 : f32
    %450 = vector.broadcast %cst_73 : f32 to vector<2x16xf32>
    %451 = arith.addf %450, %449 : vector<2x16xf32>
    %452 = arith.divf %450, %451 : vector<2x16xf32>
    %453 = arith.mulf %444, %425 : vector<2x16xf32>
    %454 = arith.mulf %438, %446 : vector<2x16xf32>
    %455 = arith.addf %453, %454 : vector<2x16xf32>
    %456 = math.tanh %455 : vector<2x16xf32>
    %457 = arith.mulf %452, %456 : vector<2x16xf32>
    %458 = vector.extract_strided_slice %301 {offsets = [10, 0], sizes = [2, 64], strides = [1, 1]} : vector<16x64xf32> to vector<2x64xf32>
    %459 = vector.extract_strided_slice %305 {offsets = [4, 0], sizes = [2, 64], strides = [1, 1]} : vector<16x64xf32> to vector<2x64xf32>
    %460 = arith.addf %458, %459 : vector<2x64xf32>
    %cst_74 = arith.constant dense<0.000000e+00> : vector<2x64xf32>
    %461 = tpu.matmul %457, %292, %cst_74 {dimension_numbers = #tpu.dot_dimension_numbers<[1], [0], [0], [1], [0, 0, 1, 1], [], []>} : vector<2x16xf32>, vector<16x64xf32>, vector<2x64xf32> -> vector<2x64xf32>
    %462 = arith.addf %460, %461 : vector<2x64xf32>
    %463 = vector.extract_strided_slice %462 {offsets = [0, 0], sizes = [2, 16], strides = [1, 1]} : vector<2x64xf32> to vector<2x16xf32>
    %464 = arith.negf %463 : vector<2x16xf32>
    %465 = math.exp %464 : vector<2x16xf32>
    %cst_75 = arith.constant 1.000000e+00 : f32
    %466 = vector.broadcast %cst_75 : f32 to vector<2x16xf32>
    %467 = arith.addf %466, %465 : vector<2x16xf32>
    %468 = arith.divf %466, %467 : vector<2x16xf32>
    %469 = vector.extract_strided_slice %462 {offsets = [0, 16], sizes = [2, 16], strides = [1, 1]} : vector<2x64xf32> to vector<2x16xf32>
    %470 = arith.negf %469 : vector<2x16xf32>
    %471 = math.exp %470 : vector<2x16xf32>
    %cst_76 = arith.constant 1.000000e+00 : f32
    %472 = vector.broadcast %cst_76 : f32 to vector<2x16xf32>
    %473 = arith.addf %472, %471 : vector<2x16xf32>
    %474 = arith.divf %472, %473 : vector<2x16xf32>
    %475 = vector.extract_strided_slice %462 {offsets = [0, 32], sizes = [2, 16], strides = [1, 1]} : vector<2x64xf32> to vector<2x16xf32>
    %476 = math.tanh %475 : vector<2x16xf32>
    %477 = vector.extract_strided_slice %462 {offsets = [0, 48], sizes = [2, 16], strides = [1, 1]} : vector<2x64xf32> to vector<2x16xf32>
    %478 = arith.negf %477 : vector<2x16xf32>
    %479 = math.exp %478 : vector<2x16xf32>
    %cst_77 = arith.constant 1.000000e+00 : f32
    %480 = vector.broadcast %cst_77 : f32 to vector<2x16xf32>
    %481 = arith.addf %480, %479 : vector<2x16xf32>
    %482 = arith.divf %480, %481 : vector<2x16xf32>
    %483 = arith.mulf %474, %455 : vector<2x16xf32>
    %484 = arith.mulf %468, %476 : vector<2x16xf32>
    %485 = arith.addf %483, %484 : vector<2x16xf32>
    %486 = math.tanh %485 : vector<2x16xf32>
    %487 = arith.mulf %482, %486 : vector<2x16xf32>
    %488 = vector.extract_strided_slice %301 {offsets = [12, 0], sizes = [2, 64], strides = [1, 1]} : vector<16x64xf32> to vector<2x64xf32>
    %489 = vector.extract_strided_slice %305 {offsets = [2, 0], sizes = [2, 64], strides = [1, 1]} : vector<16x64xf32> to vector<2x64xf32>
    %490 = arith.addf %488, %489 : vector<2x64xf32>
    %cst_78 = arith.constant dense<0.000000e+00> : vector<2x64xf32>
    %491 = tpu.matmul %487, %292, %cst_78 {dimension_numbers = #tpu.dot_dimension_numbers<[1], [0], [0], [1], [0, 0, 1, 1], [], []>} : vector<2x16xf32>, vector<16x64xf32>, vector<2x64xf32> -> vector<2x64xf32>
    %492 = arith.addf %490, %491 : vector<2x64xf32>
    %493 = vector.extract_strided_slice %492 {offsets = [0, 0], sizes = [2, 16], strides = [1, 1]} : vector<2x64xf32> to vector<2x16xf32>
    %494 = arith.negf %493 : vector<2x16xf32>
    %495 = math.exp %494 : vector<2x16xf32>
    %cst_79 = arith.constant 1.000000e+00 : f32
    %496 = vector.broadcast %cst_79 : f32 to vector<2x16xf32>
    %497 = arith.addf %496, %495 : vector<2x16xf32>
    %498 = arith.divf %496, %497 : vector<2x16xf32>
    %499 = vector.extract_strided_slice %492 {offsets = [0, 16], sizes = [2, 16], strides = [1, 1]} : vector<2x64xf32> to vector<2x16xf32>
    %500 = arith.negf %499 : vector<2x16xf32>
    %501 = math.exp %500 : vector<2x16xf32>
    %cst_80 = arith.constant 1.000000e+00 : f32
    %502 = vector.broadcast %cst_80 : f32 to vector<2x16xf32>
    %503 = arith.addf %502, %501 : vector<2x16xf32>
    %504 = arith.divf %502, %503 : vector<2x16xf32>
    %505 = vector.extract_strided_slice %492 {offsets = [0, 32], sizes = [2, 16], strides = [1, 1]} : vector<2x64xf32> to vector<2x16xf32>
    %506 = math.tanh %505 : vector<2x16xf32>
    %507 = vector.extract_strided_slice %492 {offsets = [0, 48], sizes = [2, 16], strides = [1, 1]} : vector<2x64xf32> to vector<2x16xf32>
    %508 = arith.negf %507 : vector<2x16xf32>
    %509 = math.exp %508 : vector<2x16xf32>
    %cst_81 = arith.constant 1.000000e+00 : f32
    %510 = vector.broadcast %cst_81 : f32 to vector<2x16xf32>
    %511 = arith.addf %510, %509 : vector<2x16xf32>
    %512 = arith.divf %510, %511 : vector<2x16xf32>
    %513 = arith.mulf %504, %485 : vector<2x16xf32>
    %514 = arith.mulf %498, %506 : vector<2x16xf32>
    %515 = arith.addf %513, %514 : vector<2x16xf32>
    %516 = math.tanh %515 : vector<2x16xf32>
    %517 = arith.mulf %512, %516 : vector<2x16xf32>
    %518 = vector.extract_strided_slice %301 {offsets = [14, 0], sizes = [2, 64], strides = [1, 1]} : vector<16x64xf32> to vector<2x64xf32>
    %519 = vector.extract_strided_slice %305 {offsets = [0, 0], sizes = [2, 64], strides = [1, 1]} : vector<16x64xf32> to vector<2x64xf32>
    %520 = arith.addf %518, %519 : vector<2x64xf32>
    %cst_82 = arith.constant dense<0.000000e+00> : vector<2x64xf32>
    %521 = tpu.matmul %517, %292, %cst_82 {dimension_numbers = #tpu.dot_dimension_numbers<[1], [0], [0], [1], [0, 0, 1, 1], [], []>} : vector<2x16xf32>, vector<16x64xf32>, vector<2x64xf32> -> vector<2x64xf32>
    %522 = arith.addf %520, %521 : vector<2x64xf32>
    %523 = vector.extract_strided_slice %522 {offsets = [0, 0], sizes = [2, 16], strides = [1, 1]} : vector<2x64xf32> to vector<2x16xf32>
    %524 = arith.negf %523 : vector<2x16xf32>
    %525 = math.exp %524 : vector<2x16xf32>
    %cst_83 = arith.constant 1.000000e+00 : f32
    %526 = vector.broadcast %cst_83 : f32 to vector<2x16xf32>
    %527 = arith.addf %526, %525 : vector<2x16xf32>
    %528 = arith.divf %526, %527 : vector<2x16xf32>
    %529 = vector.extract_strided_slice %522 {offsets = [0, 16], sizes = [2, 16], strides = [1, 1]} : vector<2x64xf32> to vector<2x16xf32>
    %530 = arith.negf %529 : vector<2x16xf32>
    %531 = math.exp %530 : vector<2x16xf32>
    %cst_84 = arith.constant 1.000000e+00 : f32
    %532 = vector.broadcast %cst_84 : f32 to vector<2x16xf32>
    %533 = arith.addf %532, %531 : vector<2x16xf32>
    %534 = arith.divf %532, %533 : vector<2x16xf32>
    %535 = vector.extract_strided_slice %522 {offsets = [0, 32], sizes = [2, 16], strides = [1, 1]} : vector<2x64xf32> to vector<2x16xf32>
    %536 = math.tanh %535 : vector<2x16xf32>
    %537 = vector.extract_strided_slice %522 {offsets = [0, 48], sizes = [2, 16], strides = [1, 1]} : vector<2x64xf32> to vector<2x16xf32>
    %538 = arith.negf %537 : vector<2x16xf32>
    %539 = math.exp %538 : vector<2x16xf32>
    %cst_85 = arith.constant 1.000000e+00 : f32
    %540 = vector.broadcast %cst_85 : f32 to vector<2x16xf32>
    %541 = arith.addf %540, %539 : vector<2x16xf32>
    %542 = arith.divf %540, %541 : vector<2x16xf32>
    %543 = arith.mulf %534, %515 : vector<2x16xf32>
    %544 = arith.mulf %528, %536 : vector<2x16xf32>
    %545 = arith.addf %543, %544 : vector<2x16xf32>
    %546 = math.tanh %545 : vector<2x16xf32>
    %547 = arith.mulf %542, %546 : vector<2x16xf32>
    %548 = vector.extract_strided_slice %337 {offsets = [0, 0], sizes = [2, 8], strides = [1, 1]} : vector<2x16xf32> to vector<2x8xf32>
    %549 = vector.extract_strided_slice %547 {offsets = [0, 8], sizes = [2, 8], strides = [1, 1]} : vector<2x16xf32> to vector<2x8xf32>
    %550 = tpu.concatenate %548, %549 in 1 : vector<2x8xf32>, vector<2x8xf32> -> vector<2x16xf32>
    %551 = vector.extract_strided_slice %367 {offsets = [0, 0], sizes = [2, 8], strides = [1, 1]} : vector<2x16xf32> to vector<2x8xf32>
    %552 = vector.extract_strided_slice %517 {offsets = [0, 8], sizes = [2, 8], strides = [1, 1]} : vector<2x16xf32> to vector<2x8xf32>
    %553 = tpu.concatenate %551, %552 in 1 : vector<2x8xf32>, vector<2x8xf32> -> vector<2x16xf32>
    %554 = vector.extract_strided_slice %397 {offsets = [0, 0], sizes = [2, 8], strides = [1, 1]} : vector<2x16xf32> to vector<2x8xf32>
    %555 = vector.extract_strided_slice %487 {offsets = [0, 8], sizes = [2, 8], strides = [1, 1]} : vector<2x16xf32> to vector<2x8xf32>
    %556 = tpu.concatenate %554, %555 in 1 : vector<2x8xf32>, vector<2x8xf32> -> vector<2x16xf32>
    %557 = vector.extract_strided_slice %427 {offsets = [0, 0], sizes = [2, 8], strides = [1, 1]} : vector<2x16xf32> to vector<2x8xf32>
    %558 = vector.extract_strided_slice %457 {offsets = [0, 8], sizes = [2, 8], strides = [1, 1]} : vector<2x16xf32> to vector<2x8xf32>
    %559 = tpu.concatenate %557, %558 in 1 : vector<2x8xf32>, vector<2x8xf32> -> vector<2x16xf32>
    %560 = vector.extract_strided_slice %457 {offsets = [0, 0], sizes = [2, 8], strides = [1, 1]} : vector<2x16xf32> to vector<2x8xf32>
    %561 = vector.extract_strided_slice %427 {offsets = [0, 8], sizes = [2, 8], strides = [1, 1]} : vector<2x16xf32> to vector<2x8xf32>
    %562 = tpu.concatenate %560, %561 in 1 : vector<2x8xf32>, vector<2x8xf32> -> vector<2x16xf32>
    %563 = vector.extract_strided_slice %487 {offsets = [0, 0], sizes = [2, 8], strides = [1, 1]} : vector<2x16xf32> to vector<2x8xf32>
    %564 = vector.extract_strided_slice %397 {offsets = [0, 8], sizes = [2, 8], strides = [1, 1]} : vector<2x16xf32> to vector<2x8xf32>
    %565 = tpu.concatenate %563, %564 in 1 : vector<2x8xf32>, vector<2x8xf32> -> vector<2x16xf32>
    %566 = vector.extract_strided_slice %517 {offsets = [0, 0], sizes = [2, 8], strides = [1, 1]} : vector<2x16xf32> to vector<2x8xf32>
    %567 = vector.extract_strided_slice %367 {offsets = [0, 8], sizes = [2, 8], strides = [1, 1]} : vector<2x16xf32> to vector<2x8xf32>
    %568 = tpu.concatenate %566, %567 in 1 : vector<2x8xf32>, vector<2x8xf32> -> vector<2x16xf32>
    %569 = vector.extract_strided_slice %547 {offsets = [0, 0], sizes = [2, 8], strides = [1, 1]} : vector<2x16xf32> to vector<2x8xf32>
    %570 = vector.extract_strided_slice %337 {offsets = [0, 8], sizes = [2, 8], strides = [1, 1]} : vector<2x16xf32> to vector<2x8xf32>
    %571 = tpu.concatenate %569, %570 in 1 : vector<2x8xf32>, vector<2x8xf32> -> vector<2x16xf32>
    %c0_86 = arith.constant 0 : index
    %c0_87 = arith.constant 0 : index
    %572 = vector.load %arg2[%c0_86, %c0_87] : memref<2x8xf32, #tpu.memory_space<vmem>>, vector<2x8xf32>
    %c0_88 = arith.constant 0 : index
    %c0_89 = arith.constant 0 : index
    %573 = vector.load %arg3[%c0_88, %c0_89] : memref<2x8xf32, #tpu.memory_space<vmem>>, vector<2x8xf32>
    %c0_90 = arith.constant 0 : index
    %c0_91 = arith.constant 0 : index
    %574 = vector.load %arg10[%c0_90, %c0_91] : memref<32x10xf32, #tpu.memory_space<vmem>>, vector<32x10xf32>
    %c0_92 = arith.constant 0 : index
    %c0_93 = arith.constant 0 : index
    %575 = vector.load %arg11[%c0_92, %c0_93] : memref<10x4xf32, #tpu.memory_space<vmem>>, vector<10x4xf32>
    %576 = vector.extract_strided_slice %270 {offsets = [0, 0], sizes = [1, 32], strides = [1, 1]} : vector<2x32xf32> to vector<1x32xf32>
    %577 = vector.extract_strided_slice %273 {offsets = [0, 0], sizes = [1, 32], strides = [1, 1]} : vector<2x32xf32> to vector<1x32xf32>
    %578 = vector.extract_strided_slice %276 {offsets = [0, 0], sizes = [1, 32], strides = [1, 1]} : vector<2x32xf32> to vector<1x32xf32>
    %579 = vector.extract_strided_slice %279 {offsets = [0, 0], sizes = [1, 32], strides = [1, 1]} : vector<2x32xf32> to vector<1x32xf32>
    %580 = vector.extract_strided_slice %282 {offsets = [0, 0], sizes = [1, 32], strides = [1, 1]} : vector<2x32xf32> to vector<1x32xf32>
    %581 = vector.extract_strided_slice %285 {offsets = [0, 0], sizes = [1, 32], strides = [1, 1]} : vector<2x32xf32> to vector<1x32xf32>
    %582 = vector.extract_strided_slice %288 {offsets = [0, 0], sizes = [1, 32], strides = [1, 1]} : vector<2x32xf32> to vector<1x32xf32>
    %583 = vector.extract_strided_slice %291 {offsets = [0, 0], sizes = [1, 32], strides = [1, 1]} : vector<2x32xf32> to vector<1x32xf32>
    %584 = tpu.concatenate %576, %577, %578, %579, %580, %581, %582, %583 in 0 : vector<1x32xf32>, vector<1x32xf32>, vector<1x32xf32>, vector<1x32xf32>, vector<1x32xf32>, vector<1x32xf32>, vector<1x32xf32>, vector<1x32xf32> -> vector<8x32xf32>
    %cst_94 = arith.constant dense<0.000000e+00> : vector<8x10xf32>
    %585 = tpu.matmul %584, %574, %cst_94 {dimension_numbers = #tpu.dot_dimension_numbers<[1], [0], [0], [1], [0, 0, 1, 1], [], []>} : vector<8x32xf32>, vector<32x10xf32>, vector<8x10xf32> -> vector<8x10xf32>
    %586 = math.tanh %585 : vector<8x10xf32>
    %cst_95 = arith.constant dense<0.000000e+00> : vector<4x8xf32>
    %587 = tpu.matmul %575, %586, %cst_95 {dimension_numbers = #tpu.dot_dimension_numbers<[0], [1], [1], [0], [0, 1, 1, 0], [], []>} : vector<10x4xf32>, vector<8x10xf32>, vector<4x8xf32> -> vector<4x8xf32>
    %588 = vector.extract_strided_slice %572 {offsets = [0, 0], sizes = [1, 8], strides = [1, 1]} : vector<2x8xf32> to vector<1x8xf32>
    %cst_96 = arith.constant 1.000000e+04 : f32
    %589 = vector.broadcast %cst_96 : f32 to vector<1x8xf32>
    %590 = arith.mulf %589, %588 : vector<1x8xf32>
    %591 = vector.broadcast %590 : vector<1x8xf32> to vector<4x8xf32>
    %592 = arith.subf %587, %591 : vector<4x8xf32>
    %cst_97 = arith.constant dense<0xFF800000> : vector<4xf32>
    %593 = vector.multi_reduction <maximumf>, %592, %cst_97 [1] : vector<4x8xf32> to vector<4xf32>
    %594 = vector.shape_cast %593 : vector<4xf32> to vector<4x1xf32>
    %595 = vector.broadcast %594 : vector<4x1xf32> to vector<4x8xf32>
    %596 = arith.subf %592, %595 : vector<4x8xf32>
    %597 = math.exp %596 : vector<4x8xf32>
    %cst_98 = arith.constant dense<0.000000e+00> : vector<4xf32>
    %598 = vector.multi_reduction <add>, %597, %cst_98 [1] : vector<4x8xf32> to vector<4xf32>
    %599 = vector.shape_cast %598 : vector<4xf32> to vector<4x1xf32>
    %600 = vector.broadcast %599 : vector<4x1xf32> to vector<4x8xf32>
    %601 = arith.divf %597, %600 : vector<4x8xf32>
    %cst_99 = arith.constant dense<0.000000e+00> : vector<4x32xf32>
    %602 = tpu.matmul %601, %584, %cst_99 {dimension_numbers = #tpu.dot_dimension_numbers<[1], [0], [0], [1], [0, 0, 1, 1], [], []>} : vector<4x8xf32>, vector<8x32xf32>, vector<4x32xf32> -> vector<4x32xf32>
    %603 = vector.extract_strided_slice %270 {offsets = [1, 0], sizes = [1, 32], strides = [1, 1]} : vector<2x32xf32> to vector<1x32xf32>
    %604 = vector.extract_strided_slice %273 {offsets = [1, 0], sizes = [1, 32], strides = [1, 1]} : vector<2x32xf32> to vector<1x32xf32>
    %605 = vector.extract_strided_slice %276 {offsets = [1, 0], sizes = [1, 32], strides = [1, 1]} : vector<2x32xf32> to vector<1x32xf32>
    %606 = vector.extract_strided_slice %279 {offsets = [1, 0], sizes = [1, 32], strides = [1, 1]} : vector<2x32xf32> to vector<1x32xf32>
    %607 = vector.extract_strided_slice %282 {offsets = [1, 0], sizes = [1, 32], strides = [1, 1]} : vector<2x32xf32> to vector<1x32xf32>
    %608 = vector.extract_strided_slice %285 {offsets = [1, 0], sizes = [1, 32], strides = [1, 1]} : vector<2x32xf32> to vector<1x32xf32>
    %609 = vector.extract_strided_slice %288 {offsets = [1, 0], sizes = [1, 32], strides = [1, 1]} : vector<2x32xf32> to vector<1x32xf32>
    %610 = vector.extract_strided_slice %291 {offsets = [1, 0], sizes = [1, 32], strides = [1, 1]} : vector<2x32xf32> to vector<1x32xf32>
    %611 = tpu.concatenate %603, %604, %605, %606, %607, %608, %609, %610 in 0 : vector<1x32xf32>, vector<1x32xf32>, vector<1x32xf32>, vector<1x32xf32>, vector<1x32xf32>, vector<1x32xf32>, vector<1x32xf32>, vector<1x32xf32> -> vector<8x32xf32>
    %cst_100 = arith.constant dense<0.000000e+00> : vector<8x10xf32>
    %612 = tpu.matmul %611, %574, %cst_100 {dimension_numbers = #tpu.dot_dimension_numbers<[1], [0], [0], [1], [0, 0, 1, 1], [], []>} : vector<8x32xf32>, vector<32x10xf32>, vector<8x10xf32> -> vector<8x10xf32>
    %613 = math.tanh %612 : vector<8x10xf32>
    %cst_101 = arith.constant dense<0.000000e+00> : vector<4x8xf32>
    %614 = tpu.matmul %575, %613, %cst_101 {dimension_numbers = #tpu.dot_dimension_numbers<[0], [1], [1], [0], [0, 1, 1, 0], [], []>} : vector<10x4xf32>, vector<8x10xf32>, vector<4x8xf32> -> vector<4x8xf32>
    %615 = vector.extract_strided_slice %572 {offsets = [1, 0], sizes = [1, 8], strides = [1, 1]} : vector<2x8xf32> to vector<1x8xf32>
    %cst_102 = arith.constant 1.000000e+04 : f32
    %616 = vector.broadcast %cst_102 : f32 to vector<1x8xf32>
    %617 = arith.mulf %616, %615 : vector<1x8xf32>
    %618 = vector.broadcast %617 : vector<1x8xf32> to vector<4x8xf32>
    %619 = arith.subf %614, %618 : vector<4x8xf32>
    %cst_103 = arith.constant dense<0xFF800000> : vector<4xf32>
    %620 = vector.multi_reduction <maximumf>, %619, %cst_103 [1] : vector<4x8xf32> to vector<4xf32>
    %621 = vector.shape_cast %620 : vector<4xf32> to vector<4x1xf32>
    %622 = vector.broadcast %621 : vector<4x1xf32> to vector<4x8xf32>
    %623 = arith.subf %619, %622 : vector<4x8xf32>
    %624 = math.exp %623 : vector<4x8xf32>
    %cst_104 = arith.constant dense<0.000000e+00> : vector<4xf32>
    %625 = vector.multi_reduction <add>, %624, %cst_104 [1] : vector<4x8xf32> to vector<4xf32>
    %626 = vector.shape_cast %625 : vector<4xf32> to vector<4x1xf32>
    %627 = vector.broadcast %626 : vector<4x1xf32> to vector<4x8xf32>
    %628 = arith.divf %624, %627 : vector<4x8xf32>
    %cst_105 = arith.constant dense<0.000000e+00> : vector<4x32xf32>
    %629 = tpu.matmul %628, %611, %cst_105 {dimension_numbers = #tpu.dot_dimension_numbers<[1], [0], [0], [1], [0, 0, 1, 1], [], []>} : vector<4x8xf32>, vector<8x32xf32>, vector<4x32xf32> -> vector<4x32xf32>
    %c0_106 = arith.constant 0 : index
    %c0_107 = arith.constant 0 : index
    %630 = vector.load %arg12[%c0_106, %c0_107] : memref<16x10xf32, #tpu.memory_space<vmem>>, vector<16x10xf32>
    %c0_108 = arith.constant 0 : index
    %c0_109 = arith.constant 0 : index
    %631 = vector.load %arg13[%c0_108, %c0_109] : memref<10x4xf32, #tpu.memory_space<vmem>>, vector<10x4xf32>
    %632 = vector.extract_strided_slice %550 {offsets = [0, 0], sizes = [1, 16], strides = [1, 1]} : vector<2x16xf32> to vector<1x16xf32>
    %633 = vector.extract_strided_slice %553 {offsets = [0, 0], sizes = [1, 16], strides = [1, 1]} : vector<2x16xf32> to vector<1x16xf32>
    %634 = vector.extract_strided_slice %556 {offsets = [0, 0], sizes = [1, 16], strides = [1, 1]} : vector<2x16xf32> to vector<1x16xf32>
    %635 = vector.extract_strided_slice %559 {offsets = [0, 0], sizes = [1, 16], strides = [1, 1]} : vector<2x16xf32> to vector<1x16xf32>
    %636 = vector.extract_strided_slice %562 {offsets = [0, 0], sizes = [1, 16], strides = [1, 1]} : vector<2x16xf32> to vector<1x16xf32>
    %637 = vector.extract_strided_slice %565 {offsets = [0, 0], sizes = [1, 16], strides = [1, 1]} : vector<2x16xf32> to vector<1x16xf32>
    %638 = vector.extract_strided_slice %568 {offsets = [0, 0], sizes = [1, 16], strides = [1, 1]} : vector<2x16xf32> to vector<1x16xf32>
    %639 = vector.extract_strided_slice %571 {offsets = [0, 0], sizes = [1, 16], strides = [1, 1]} : vector<2x16xf32> to vector<1x16xf32>
    %640 = tpu.concatenate %632, %633, %634, %635, %636, %637, %638, %639 in 0 : vector<1x16xf32>, vector<1x16xf32>, vector<1x16xf32>, vector<1x16xf32>, vector<1x16xf32>, vector<1x16xf32>, vector<1x16xf32>, vector<1x16xf32> -> vector<8x16xf32>
    %cst_110 = arith.constant dense<0.000000e+00> : vector<8x10xf32>
    %641 = tpu.matmul %640, %630, %cst_110 {dimension_numbers = #tpu.dot_dimension_numbers<[1], [0], [0], [1], [0, 0, 1, 1], [], []>} : vector<8x16xf32>, vector<16x10xf32>, vector<8x10xf32> -> vector<8x10xf32>
    %642 = math.tanh %641 : vector<8x10xf32>
    %cst_111 = arith.constant dense<0.000000e+00> : vector<4x8xf32>
    %643 = tpu.matmul %631, %642, %cst_111 {dimension_numbers = #tpu.dot_dimension_numbers<[0], [1], [1], [0], [0, 1, 1, 0], [], []>} : vector<10x4xf32>, vector<8x10xf32>, vector<4x8xf32> -> vector<4x8xf32>
    %644 = vector.extract_strided_slice %573 {offsets = [0, 0], sizes = [1, 8], strides = [1, 1]} : vector<2x8xf32> to vector<1x8xf32>
    %cst_112 = arith.constant 1.000000e+04 : f32
    %645 = vector.broadcast %cst_112 : f32 to vector<1x8xf32>
    %646 = arith.mulf %645, %644 : vector<1x8xf32>
    %647 = vector.broadcast %646 : vector<1x8xf32> to vector<4x8xf32>
    %648 = arith.subf %643, %647 : vector<4x8xf32>
    %cst_113 = arith.constant dense<0xFF800000> : vector<4xf32>
    %649 = vector.multi_reduction <maximumf>, %648, %cst_113 [1] : vector<4x8xf32> to vector<4xf32>
    %650 = vector.shape_cast %649 : vector<4xf32> to vector<4x1xf32>
    %651 = vector.broadcast %650 : vector<4x1xf32> to vector<4x8xf32>
    %652 = arith.subf %648, %651 : vector<4x8xf32>
    %653 = math.exp %652 : vector<4x8xf32>
    %cst_114 = arith.constant dense<0.000000e+00> : vector<4xf32>
    %654 = vector.multi_reduction <add>, %653, %cst_114 [1] : vector<4x8xf32> to vector<4xf32>
    %655 = vector.shape_cast %654 : vector<4xf32> to vector<4x1xf32>
    %656 = vector.broadcast %655 : vector<4x1xf32> to vector<4x8xf32>
    %657 = arith.divf %653, %656 : vector<4x8xf32>
    %cst_115 = arith.constant dense<0.000000e+00> : vector<4x16xf32>
    %658 = tpu.matmul %657, %640, %cst_115 {dimension_numbers = #tpu.dot_dimension_numbers<[1], [0], [0], [1], [0, 0, 1, 1], [], []>} : vector<4x8xf32>, vector<8x16xf32>, vector<4x16xf32> -> vector<4x16xf32>
    %659 = vector.extract_strided_slice %550 {offsets = [1, 0], sizes = [1, 16], strides = [1, 1]} : vector<2x16xf32> to vector<1x16xf32>
    %660 = vector.extract_strided_slice %553 {offsets = [1, 0], sizes = [1, 16], strides = [1, 1]} : vector<2x16xf32> to vector<1x16xf32>
    %661 = vector.extract_strided_slice %556 {offsets = [1, 0], sizes = [1, 16], strides = [1, 1]} : vector<2x16xf32> to vector<1x16xf32>
    %662 = vector.extract_strided_slice %559 {offsets = [1, 0], sizes = [1, 16], strides = [1, 1]} : vector<2x16xf32> to vector<1x16xf32>
    %663 = vector.extract_strided_slice %562 {offsets = [1, 0], sizes = [1, 16], strides = [1, 1]} : vector<2x16xf32> to vector<1x16xf32>
    %664 = vector.extract_strided_slice %565 {offsets = [1, 0], sizes = [1, 16], strides = [1, 1]} : vector<2x16xf32> to vector<1x16xf32>
    %665 = vector.extract_strided_slice %568 {offsets = [1, 0], sizes = [1, 16], strides = [1, 1]} : vector<2x16xf32> to vector<1x16xf32>
    %666 = vector.extract_strided_slice %571 {offsets = [1, 0], sizes = [1, 16], strides = [1, 1]} : vector<2x16xf32> to vector<1x16xf32>
    %667 = tpu.concatenate %659, %660, %661, %662, %663, %664, %665, %666 in 0 : vector<1x16xf32>, vector<1x16xf32>, vector<1x16xf32>, vector<1x16xf32>, vector<1x16xf32>, vector<1x16xf32>, vector<1x16xf32>, vector<1x16xf32> -> vector<8x16xf32>
    %cst_116 = arith.constant dense<0.000000e+00> : vector<8x10xf32>
    %668 = tpu.matmul %667, %630, %cst_116 {dimension_numbers = #tpu.dot_dimension_numbers<[1], [0], [0], [1], [0, 0, 1, 1], [], []>} : vector<8x16xf32>, vector<16x10xf32>, vector<8x10xf32> -> vector<8x10xf32>
    %669 = math.tanh %668 : vector<8x10xf32>
    %cst_117 = arith.constant dense<0.000000e+00> : vector<4x8xf32>
    %670 = tpu.matmul %631, %669, %cst_117 {dimension_numbers = #tpu.dot_dimension_numbers<[0], [1], [1], [0], [0, 1, 1, 0], [], []>} : vector<10x4xf32>, vector<8x10xf32>, vector<4x8xf32> -> vector<4x8xf32>
    %671 = vector.extract_strided_slice %573 {offsets = [1, 0], sizes = [1, 8], strides = [1, 1]} : vector<2x8xf32> to vector<1x8xf32>
    %cst_118 = arith.constant 1.000000e+04 : f32
    %672 = vector.broadcast %cst_118 : f32 to vector<1x8xf32>
    %673 = arith.mulf %672, %671 : vector<1x8xf32>
    %674 = vector.broadcast %673 : vector<1x8xf32> to vector<4x8xf32>
    %675 = arith.subf %670, %674 : vector<4x8xf32>
    %cst_119 = arith.constant dense<0xFF800000> : vector<4xf32>
    %676 = vector.multi_reduction <maximumf>, %675, %cst_119 [1] : vector<4x8xf32> to vector<4xf32>
    %677 = vector.shape_cast %676 : vector<4xf32> to vector<4x1xf32>
    %678 = vector.broadcast %677 : vector<4x1xf32> to vector<4x8xf32>
    %679 = arith.subf %675, %678 : vector<4x8xf32>
    %680 = math.exp %679 : vector<4x8xf32>
    %cst_120 = arith.constant dense<0.000000e+00> : vector<4xf32>
    %681 = vector.multi_reduction <add>, %680, %cst_120 [1] : vector<4x8xf32> to vector<4xf32>
    %682 = vector.shape_cast %681 : vector<4xf32> to vector<4x1xf32>
    %683 = vector.broadcast %682 : vector<4x1xf32> to vector<4x8xf32>
    %684 = arith.divf %680, %683 : vector<4x8xf32>
    %cst_121 = arith.constant dense<0.000000e+00> : vector<4x16xf32>
    %685 = tpu.matmul %684, %667, %cst_121 {dimension_numbers = #tpu.dot_dimension_numbers<[1], [0], [0], [1], [0, 0, 1, 1], [], []>} : vector<4x8xf32>, vector<8x16xf32>, vector<4x16xf32> -> vector<4x16xf32>
    %686 = tpu.concatenate %602, %658, %601, %657 in 1 : vector<4x32xf32>, vector<4x16xf32>, vector<4x8xf32>, vector<4x8xf32> -> vector<4x64xf32>
    %c0_122 = arith.constant 0 : index
    %c0_123 = arith.constant 0 : index
    %c0_124 = arith.constant 0 : index
    %687 = vector.load %arg14[%c0_122, %c0_123, %c0_124] : memref<2x4x64xf32, #tpu.memory_space<vmem>>, vector<1x4x64xf32>
    %688 = vector.shape_cast %687 : vector<1x4x64xf32> to vector<4x64xf32>
    %689 = vector.shape_cast %686 : vector<4x64xf32> to vector<1x4x64xf32>
    tpu.vector_store %arg14[%c0_122, %c0_123, %c0_124], %689 {strides = array<i32>} : memref<2x4x64xf32, #tpu.memory_space<vmem>>, vector<1x4x64xf32>,
    %690 = tpu.concatenate %629, %685, %628, %684 in 1 : vector<4x32xf32>, vector<4x16xf32>, vector<4x8xf32>, vector<4x8xf32> -> vector<4x64xf32>
    %c1 = arith.constant 1 : index
    %c0_125 = arith.constant 0 : index
    %c0_126 = arith.constant 0 : index
    %691 = vector.load %arg14[%c1, %c0_125, %c0_126] : memref<2x4x64xf32, #tpu.memory_space<vmem>>, vector<1x4x64xf32>
    %692 = vector.shape_cast %691 : vector<1x4x64xf32> to vector<4x64xf32>
    %693 = vector.shape_cast %690 : vector<4x64xf32> to vector<1x4x64xf32>
    tpu.vector_store %arg14[%c1, %c0_125, %c0_126], %693 {strides = array<i32>} : memref<2x4x64xf32, #tpu.memory_space<vmem>>, vector<1x4x64xf32>,
    return
  }
}

</mosaic_0001>

<bundles_post_ra>
// kernel: tpu_custom_call.1
= control target key start
LH: loop header
LB: loop body
LE: loop exit
PB: predicated region body
PF: predicated region fallthrough
CT: control target
= control target key end

     0   :  { %19 = vsyncpa [#allocation3], 0  ;;  %s4882_s0 = inlined_call_operand.vmem [shape: f32[16,12], index: 0, kind: input, shape index: {}]   ;;  %s4883_s1 = inlined_call_operand.vmem [shape: f32[16,10], index: 1, kind: input, shape index: {}]   ;;  %s4884_s2 = inlined_call_operand.hbm [shape: f32[2,8], index: 2, kind: input, shape index: {}]   ;;  %s4885_s3 = inlined_call_operand.hbm [shape: f32[2,8], index: 3, kind: input, shape index: {}]   ;;  %s4886_s4 = inlined_call_operand.vmem [shape: f32[12,128], index: 4, kind: input, shape index: {}]   ;;  %s4887_s5 = inlined_call_operand.vmem [shape: f32[32,128], index: 5, kind: input, shape index: {}]   ;;  %s4888_s6 = inlined_call_operand.vmem [shape: f32[1,128], index: 6, kind: input, shape index: {}]   ;;  %s4889_s7 = inlined_call_operand.vmem [shape: f32[10,64], index: 7, kind: input, shape index: {}]   ;;  %s4890_s8 = inlined_call_operand.hbm [shape: f32[16,64], index: 8, kind: input, shape index: {}]   ;;  %s4891_s9 = inlined_call_operand.hbm [shape: f32[1,64], index: 9, kind: input, shape index: {}]   ;;  %s4892_s10 = inlined_call_operand.vmem [shape: f32[32,10], index: 10, kind: input, shape index: {}]   ;;  %s4893_s11 = inlined_call_operand.vmem [shape: f32[10,4], index: 11, kind: input, shape index: {}]   ;;  %s4894_s12 = inlined_call_operand.vmem [shape: f32[16,10], index: 12, kind: input, shape index: {}]   ;;  %s4895_s13 = inlined_call_operand.vmem [shape: f32[10,4], index: 13, kind: input, shape index: {}]   ;;  %s4896_s14 = inlined_call_operand.hbm [shape: f32[2,4,64], index: 14, kind: output, shape index: {}]  }
   0x1   :  { %20 = vsyncpa [#allocation6], 0 }
   0x2   :  { %21 = vsyncpa [#allocation9], 0 }
   0x3   :  { %22 = vsyncpa [#allocation4], 0  ;;  %s4117_s29 = smov [#allocation5]   ;;  %s4118_s15 = smov [#allocation2]  }
   0x4   :  { %s43_s30 = sshll.u32 %s4117_s29, 4  ;;  %s33_s16 = sshll.u32 %s4118_s15, 4  ;;  %s44_s30 = int_to_ptr.vmem [resolvable:$true] %s43_s30  ;;  %s34_s16 = int_to_ptr.vmem [resolvable:$true] %s33_s16 }
   0x5   :  { %s3999_s19 = scalar_lea.hbm %s4885_s3, 32 }
   0x6   :  { %p4000_p0 = scmp.ne.s32.totalorder %s4885_s3, %s3999_s19  ;;  %p4003_p1 = scmp.lt.u32.totalorder %s3999_s19, %s4885_s3 }
   0x8   :  { %p4005_p2 = pnand %p4003_p1, %p4000_p0 }
   0xa   :  { %4008 = shalt.err (!%p4005_p2)
}
   0xb   :  { %s4009_s24 = scalar_lea.vmem %s44_s30, 32  ;;  %p4014_p4 = scmp.lt.s32.totalorder %s44_s30, %s44_s30 }
   0xc   :  { %p4010_p3 = scmp.ne.s32.totalorder %s44_s30, %s4009_s24  ;;  %p4015_p5 = scmp.lt.s32.totalorder %s4009_s24, %s4009_s24 }
   0xe   :  { %p4016_p6 = por %p4015_p5, %p4014_p4 }
  0x10   :  { %p4017_p7 = pnand %p4016_p6, %p4010_p3 }
  0x12   :  { %4020 = shalt.err (!%p4017_p7)
}
  0x13   :  { %46 = dma.hbm_to_vmem [thread:$0]  %s4885_s3, 32, %s44_s30, [#allocation6]  }
  0x14   :  { %s4021_s29 = scalar_lea.hbm %s4884_s2, 32 }
  0x15   :  { %p4022_p8 = scmp.ne.s32.totalorder %s4884_s2, %s4021_s29  ;;  %p4025_p9 = scmp.lt.u32.totalorder %s4021_s29, %s4884_s2 }
  0x17   :  { %p4027_p10 = pnand %p4025_p9, %p4022_p8 }
  0x19   :  { %4030 = shalt.err (!%p4027_p10)
}
  0x1a   :  { %s4031_s20 = scalar_lea.vmem %s34_s16, 32  ;;  %p4036_p12 = scmp.lt.s32.totalorder %s34_s16, %s34_s16 }
  0x1b   :  { %p4032_p11 = scmp.ne.s32.totalorder %s34_s16, %s4031_s20  ;;  %p4037_p13 = scmp.lt.s32.totalorder %s4031_s20, %s4031_s20 }
  0x1d   :  { %p4038_p0 = por %p4037_p13, %p4036_p12 }
  0x1f   :  { %p4039_p1 = pnand %p4038_p0, %p4032_p11 }
  0x21   :  { %4042 = shalt.err (!%p4039_p1)
}
  0x22   :  { %36 = dma.hbm_to_vmem [thread:$0]  %s4884_s2, 32, %s34_s16, [#allocation3]  }
  0x23   :  { %s4119_s21 = smov [#allocation7]   ;;  %s4043_s25 = scalar_lea.hbm %s4890_s8, 256 }
  0x24   :  { %s60_s22 = sshll.u32 %s4119_s21, 4  ;;  %p4044_p2 = scmp.ne.s32.totalorder %s4890_s8, %s4043_s25  ;;  %s61_s22 = int_to_ptr.vmem [resolvable:$true] %s60_s22 }
  0x25   :  { %p4047_p3 = scmp.lt.u32.totalorder %s4043_s25, %s4890_s8 }
  0x27   :  { %p4049_p4 = pnand %p4047_p3, %p4044_p2 }
  0x29   :  { %4052 = shalt.err (!%p4049_p4)
}
  0x2a   :  { %s4053_s15 = scalar_lea.vmem %s61_s22, 256  ;;  %p4058_p6 = scmp.lt.s32.totalorder %s61_s22, %s61_s22 }
  0x2b   :  { %p4054_p5 = scmp.ne.s32.totalorder %s61_s22, %s4053_s15  ;;  %p4059_p7 = scmp.lt.s32.totalorder %s4053_s15, %s4053_s15 }
  0x2d   :  { %p4060_p8 = por %p4059_p7, %p4058_p6 }
  0x2f   :  { %p4061_p9 = pnand %p4060_p8, %p4054_p5 }
  0x31   :  { %4064 = shalt.err (!%p4061_p9)
}
  0x32   :  { %s4120_s2 = smov 128   ;;  %s4121_s16 = smov 8  }
  0x33   :  { %66 = dma.hbm_to_vmem [thread:$0]  %s4890_s8, 256, %s61_s22, [#allocation6], %s4120_s2, %s4120_s2, %s4121_s16  }
  0x34   :  { %s4122_s19 = smov [#allocation8]   ;;  %s4065_s21 = scalar_lea.hbm %s4891_s9, 16 }
  0x35   :  { %s73_s20 = sshll.u32 %s4122_s19, 4  ;;  %p4066_p10 = scmp.ne.s32.totalorder %s4891_s9, %s4065_s21  ;;  %s74_s20 = int_to_ptr.vmem [resolvable:$true] %s73_s20 }
  0x36   :  { %p4069_p11 = scmp.lt.u32.totalorder %s4065_s21, %s4891_s9 }
  0x38   :  { %p4071_p12 = pnand %p4069_p11, %p4066_p10 }
  0x3a   :  { %4074 = shalt.err (!%p4071_p12)
}
  0x3b   :  { %s4075_s27 = scalar_lea.vmem %s74_s20, 16  ;;  %s4079_s8 = scalar_lea.vmem %s74_s20, 32 }
  0x3c   :  { %p4076_p13 = scmp.ne.s32.totalorder %s74_s20, %s4075_s27  ;;  %p4080_p0 = scmp.lt.s32.totalorder %s74_s20, %s74_s20 }
  0x3d   :  { %p4081_p1 = scmp.lt.s32.totalorder %s4079_s8, %s4075_s27 }
  0x3f   :  { %p4082_p2 = por %p4081_p1, %p4080_p0 }
  0x41   :  { %p4083_p3 = pnand %p4082_p2, %p4076_p13 }
  0x43   :  { %4086 = shalt.err (!%p4083_p3)
}
  0x44   :  { %76 = dma.hbm_to_vmem [thread:$0]  %s4891_s9, 16, %s74_s20, [#allocation9]  }
  0x45   :  { %4109 = dma.done.wait [#allocation3], 32  }
  0x46   :  { %4110 = vsyncadd [#allocation3], 4294967264 }
  0x47   :  { %4111 = dma.done.wait [#allocation6], 288  }
  0x48   :  { %4112 = vsyncadd [#allocation6], 4294967008 }
  0x49   :  { %4113 = dma.done.wait [#allocation9], 16  }
  0x4a   :  { %4114 = vsyncadd [#allocation9], 4294967280  ;;  %vm115_vm0 = vcmask 1043456   ;;  %vm108_vm1 = vcmask 97280   ;;  %vm4123_vm2 = vmmov 1   ;;  %v99_v0 = vld [vmem:[%s4886_s4] sm:$0xff]  ;;  %v295_v13 = vlaneseq }
  0x4b   :  { %vm3727_vm3 = vmpackc.low %vm115_vm0, %vm4123_vm2  ;;  %v100_v1 = vld [vmem:[%s4886_s4 + $0x8] sm:$0xf]  ;;  %v97_v2 = vld [vmem:[%s4882_s0] sm:$0xff]  ;;  %v4124_v8 = vmov 0.0|0.0   ;;  %vm4125_vm4 = vmmov 0   ;;  %v4126_v12 = vmov 0.0  }
  0x4c   :  { %v3726_v3 = vpack.c.bf16 %v100_v1, %v99_v0  ;;  %3496 = vmatprep.mubr.msk.f32.mxu0 %vm108_vm1, %v97_v2  ;;  %v291_v4 = vld [vmem:[%s4887_s5] sm:$0xff]  ;;  %v292_v5 = vld [vmem:[%s4887_s5 + $0x8] sm:$0xff]  ;;  %v293_v9 = vld [vmem:[%s4887_s5 + $0x10] sm:$0xff]  ;;  %v4306_v14 = vand.u32 127, %v295_v13  ;;  %s4128_s26 = smov 32   ;;  %vm212_vm6 = vcmask 1041408  }
  0x4d   :  { %v98_v6 = vld [vmem:[%s4882_s0 + $0x8] sm:$0xff]  ;;  %v4280_v7 = vpack.c.bf16 %v292_v5, %v291_v4  ;;  %v294_v10 = vld [vmem:[%s4887_s5 + $0x18] sm:$0xff]  ;;  %v3332_v17 = vld [vmem:[%s4888_s6] ss:$0 sm:$0xff]  ;;  %s4127_s6 = smov 64   ;;  %vm205_vm8 = vcmask 80896  }
  0x4e   :  { %3728 = vmatprep.subr.msk.bf16.mxu0 %vm3727_vm3, %v3726_v3  ;;  %v4291_v11 = vpack.c.bf16 %v294_v10, %v293_v9  ;;  %v297_v15 = vand.u32 31, %v4306_v14  ;;  %v196_v48 = vld [vmem:[%s4889_s7] sm:$0xff]  ;;  %v197_v49 = vld [vmem:[%s4889_s7 + $0x8] sm:$0x3]  ;;  %vm3733_vm7 = vmpackc.low %vm212_vm6, %vm4123_vm2  ;;  %v1224_v56 = vand.u32 15, %v4306_v14  ;;  %vm310_vm10 = vcmask 261120  }
  0x4f   :  { %3731 = vmatpush3.bf16.msk.msra.mxu0 %vm3727_vm3, %v3726_v3  ;;  %v194_v50 = vld [vmem:[%s4883_s1] sm:$0xff]  ;;  %v3732_v51 = vpack.c.bf16 %v197_v49, %v196_v48  ;;  %v195_v52 = vld [vmem:[%s4883_s1 + $0x8] sm:$0xff]  ;;  %v4356_v58 = vld [vmem:[#allocation8] ss:$0 sm:$0xff]  ;;  %s4129_s1 = smov 96   ;;  %s4130_s7 = smov 16  }
  0x50   :  { %3738 = vmatprep.subr.bf16.mxu0 %v4124_v8  ;;  %vm298_vm5 = vcmp.lt.s32.totalorder %v297_v15, 16  ;;  %3503 = vmatprep.mubr.msk.f32.mxu1 %vm205_vm8, %v194_v50  ;;  %vm1225_vm9 = vcmp.lt.s32.totalorder %v1224_v56, 8  ;;  %s4131_s9 = smov 80   ;;  %vm1169_vm11 = vcmask 130048   ;;  %vm2176_vm12 = vcmask 1040384   ;;  %s4133_s29 = smov 56  }
  0x51   :  { %v3340_v16 = vsel %vm298_vm5, 1.0, %v4126_v12  ;;  %3734 = vmatprep.subr.msk.bf16.mxu1 %vm3733_vm7, %v3732_v51  ;;  %v4354_v57 = vsel %vm1225_vm9, 1.0, %v4126_v12  ;;  %vm2179_vm13 = vcmask 1042432   ;;  %vm2182_vm14 = vcmask 1044480   ;;  %s4134_s15 = smov [#allocation10]  }
  0x52   :  { %3497 = vmatmul.mubr.msk.f32.vlgmr.msra.gmra.mrb[0].mxu0 %vm108_vm1, %v98_v6  ;;  %v303_v18 = vsub.f32 1.0, %v3340_v16  ;;  %3737 = vmatpush3.bf16.msk.msra.mxu1 %vm3733_vm7, %v3732_v51  ;;  %v1230_v60 = vsub.f32 1.0, %v4354_v57  ;;  %vm2184_vm15 = vcmask 1045504   ;;  %vm2186_vm1 = vcmask 1046528   ;;  %s3318_s2 = sshll.u32 %s4134_s15, 4  ;;  %s3319_s2 = int_to_ptr.vmem [resolvable:$true] %s3318_s2 }
  0x53   :  { %3740 = vmatpush3.bf16.msra.mxu0 %v4280_v7  ;;  %3514 = vmatprep.mubr.msk.f32.mxu0 %vm4125_vm4, %v4126_v12  ;;  %vm2376_vm2 = vcmask 60416   ;;  %vm2094_vm3 = vcmask 64512   ;;  %vm3296_vm5 = vcmask 519168   ;;  %p4092_p5 = scmp.lt.s32.totalorder %s3319_s2, %s3319_s2 }
  0x54   :  { %3741 = vmatprep.subr.bf16.mxu0 %v4124_v8  ;;  %3744 = vmatprep.subr.bf16.mxu1 %v4124_v8 }
  0x55   :  { %3504 = vmatmul.mubr.msk.f32.vlgmr.msra.gmra.mrb[0].mxu1 %vm205_vm8, %v195_v52 }
  0x56   :  { %3746 = vmatpush3.bf16.msra.mxu1 %v4280_v7  ;;  %3525 = vmatprep.mubr.msk.f32.mxu1 %vm4125_vm4, %v4126_v12 }
  0x57   :  { %3743 = vmatpush3.bf16.msra.mxu0 %v4291_v11  ;;  %3747 = vmatprep.subr.bf16.mxu1 %v4124_v8 }
  0x58   :  { %3750 = vmatprep.subr.bf16.mxu0 %v4124_v8 }
  0x5a   :  { %3515 = vmatmul.mubr.f32.vlgmr.msra.gmra.mrb[2].mxu0 %v4126_v12  ;;  %3749 = vmatpush3.bf16.msra.mxu1 %v4291_v11 }
  0x5b   :  { %3752 = vmatpush3.bf16.msra.mxu0 %v4280_v7  ;;  %3536 = vmatprep.mubr.msk.f32.mxu0 %vm4125_vm4, %v4126_v12 }
  0x5c   :  { %3753 = vmatprep.subr.bf16.mxu0 %v4124_v8  ;;  %3756 = vmatprep.subr.bf16.mxu1 %v4124_v8 }
  0x5f   :  { %3755 = vmatpush3.bf16.msra.mxu0 %v4291_v11 }
  0x60   :  { %3762 = vmatprep.subr.bf16.mxu0 %v4124_v8 }
 0x125   :  { %v3498_v19 = vpop.f32.mrb[0].mxu0 }
 0x126   :  { %v191_v20 = vadd.f32 %v3498_v19, %v3332_v17  ;;  %v185_v21 = vpop.f32.mrb[1].mxu0 }
 0x127   :  { %v186_v22 = vadd.f32 %v3332_v17, %v185_v21 }
 0x128   :  { %v305_v23 = vmul.f32 %v303_v18, %v191_v20  ;;  %v302_v28 = vmul.f32 %v3340_v16, %v191_v20  ;;  %v4358_v59 = vpop.f32.mrb[0].mxu1 }
 0x129   :  { %v301_v24 = vmul.f32 %v3340_v16, %v186_v22  ;;  %v304_v25 = vmul.f32 %v303_v18, %v186_v22  ;;  %v282_v61 = vpop.f32.mrb[1].mxu1 }
 0x12a   :  { %v409_v26 = vrot.slane %v305_v23, 2  ;;  %v307_v27 = vrot.slane %v305_v23, 6  ;;  %v4362_v62 = vadd.f32 %v4356_v58, %v282_v61 }
 0x12b   :  { %v840_v29 = vrot.slane %v304_v25, 2  ;;  %v733_v30 = vrot.slane %v304_v25, 6 }
 0x12c   :  { %v4313_v31 = vadd.f32 %v307_v27, %v301_v24  ;;  %v4315_v32 = vadd.f32 %v409_v26, %v301_v24  ;;  %v4367_v63 = vmul.f32 %v1230_v60, %v4362_v62 }
 0x12d   :  { %v380_v33 = vpop.f32.mrb[2].mxu0  ;;  %v4317_v34 = vadd.f32 %v733_v30, %v302_v28  ;;  %v4319_v35 = vadd.f32 %v840_v29, %v302_v28 }
 0x12e   :  { %v384_v36 = vadd.f32 %v380_v33, %v4313_v31  ;;  %v3516_v37 = vpop.f32.mrb[3].mxu0 }
 0x130   :  { %3847 = vtanh.f32 %v384_v36  ;;  %v3341_v39 = vmul.f32 -1.442695, %v384_v36 }
 0x132   :  { %3849 = vpow2.f32 %v3341_v39 }
 0x13a   :  { %v3848_v38 = vpop.eup %3847 }
 0x13b   :  { %394 = vrot.lane.b32.xlu0 %v3848_v38, %s4127_s6 }
 0x13c   :  { %v3850_v40 = vpop.eup %3849 }
 0x13d   :  { %v388_v41 = vadd.f32 1.0, %v3850_v40 }
 0x13f   :  { %3851 = vrcp.f32 %v388_v41 }
 0x149   :  { %v3852_v42 = vpop.eup %3851 }
 0x14a   :  { %v392_v45 = vmul.f32 0.0, %v3852_v42 }
 0x1ad   :  { %v395_v43 = vpop.permute.xlu0 %394 }
 0x1ae   :  { %v397_v44 = vmul.f32 %v3852_v42, %v395_v43 }
 0x1b0   :  { %399 = vrot.lane.b32.xlu0 %v397_v44, %s4128_s26 }
 0x222   :  { %v400_v46 = vpop.permute.xlu0 %399 }
 0x223   :  { %v402_v47 = vadd.f32 %v400_v46, %v392_v45 }
 0x225   :  { %3853 = vtanh.f32 %v402_v47  ;;  %v499_v17 = vrot.slane %v402_v47, 6 }
 0x22f   :  { %v3854_v53 = vpop.eup %3853 }
 0x230   :  { %405 = vrot.lane.b32.xlu1 %v3854_v53, %s4127_s6 }
 0x2a2   :  { %v406_v54 = vpop.permute.xlu1 %405 }
 0x2a3   :  { %v4348_v55 = vmul.f32 %v3852_v42, %v406_v54 }
 0x2a5   :  { %413 = vrot.lane.b32.xlu1 %v4348_v55, %s4128_s26 }
 0x317   :  { %v4369_v0 = vpop.permute.xlu1 %413 }
 0x318   :  { %3526 = vmatmul.mubr.msk.f32.vlgmr.msra.gmra.mrb[2].mxu1 %vm310_vm10, %v4369_v0 }
 0x319   :  { %3758 = vmatpush3.bf16.msra.mxu1 %v4280_v7  ;;  %3547 = vmatprep.mubr.msk.f32.mxu1 %vm4125_vm4, %v4126_v12 }
 0x31a   :  { %3759 = vmatprep.subr.bf16.mxu1 %v4124_v8 }
 0x31d   :  { %3761 = vmatpush3.bf16.msra.mxu1 %v4291_v11 }
 0x31e   :  { %3768 = vmatprep.subr.bf16.mxu1 %v4124_v8 }
 0x3eb   :  { %v483_v1 = vpop.f32.mrb[2].mxu1 }
 0x3ec   :  { %v488_v2 = vrot.slane %v483_v1, 6  ;;  %v3527_v3 = vpop.f32.mrb[3].mxu1 }
 0x3ee   :  { %v490_v4 = vadd.f32 %v488_v2, %v4315_v32 }
 0x3f0   :  { %3855 = vtanh.f32 %v490_v4  ;;  %v3343_v6 = vmul.f32 -1.442695, %v490_v4 }
 0x3f2   :  { %3857 = vpow2.f32 %v3343_v6 }
 0x3fa   :  { %v3856_v5 = vpop.eup %3855 }
 0x3fb   :  { %503 = vrot.lane.b32.xlu0 %v3856_v5, %s4127_s6 }
 0x3fc   :  { %v3858_v9 = vpop.eup %3857 }
 0x3fd   :  { %v494_v10 = vadd.f32 1.0, %v3858_v9 }
 0x3ff   :  { %3859 = vrcp.f32 %v494_v10 }
 0x409   :  { %v3860_v14 = vpop.eup %3859 }
 0x40a   :  { %v501_v18 = vmul.f32 %v3860_v14, %v499_v17 }
 0x46d   :  { %v504_v15 = vpop.permute.xlu0 %503 }
 0x46e   :  { %v506_v16 = vmul.f32 %v3860_v14, %v504_v15 }
 0x470   :  { %508 = vrot.lane.b32.xlu1 %v506_v16, %s4128_s26 }
 0x4e2   :  { %v509_v19 = vpop.permute.xlu1 %508 }
 0x4e3   :  { %v511_v20 = vadd.f32 %v509_v19, %v501_v18 }
 0x4e5   :  { %3861 = vtanh.f32 %v511_v20  ;;  %v606_v41 = vrot.slane %v511_v20, 6 }
 0x4ef   :  { %v3862_v21 = vpop.eup %3861 }
 0x4f0   :  { %514 = vrot.lane.b32.xlu0 %v3862_v21, %s4127_s6 }
 0x562   :  { %v515_v22 = vpop.permute.xlu0 %514 }
 0x563   :  { %v4383_v23 = vmul.f32 %v3860_v14, %v515_v22 }
 0x565   :  { %v519_v24 = vrot.slane %v4383_v23, 2 }
 0x567   :  { %520 = vrot.lane.b32.xlu1 %v519_v24, %s4128_s26 }
 0x5d9   :  { %v521_v25 = vpop.permute.xlu1 %520 }
 0x5da   :  { %3537 = vmatmul.mubr.msk.f32.vlgmr.msra.gmra.mrb[4].mxu0 %vm310_vm10, %v521_v25 }
 0x5db   :  { %3764 = vmatpush3.bf16.msra.mxu0 %v4280_v7  ;;  %3558 = vmatprep.mubr.msk.f32.mxu0 %vm4125_vm4, %v4126_v12 }
 0x5dc   :  { %3765 = vmatprep.subr.bf16.mxu0 %v4124_v8 }
 0x5df   :  { %3767 = vmatpush3.bf16.msra.mxu0 %v4291_v11 }
 0x5e0   :  { %3774 = vmatprep.subr.bf16.mxu0 %v4124_v8 }
 0x6ad   :  { %v590_v26 = vpop.f32.mrb[4].mxu0 }
 0x6ae   :  { %v595_v27 = vrot.slane %v590_v26, 4  ;;  %v3538_v28 = vpop.f32.mrb[5].mxu0 }
 0x6b0   :  { %v597_v29 = vadd.f32 %v595_v27, %v4313_v31 }
 0x6b2   :  { %3863 = vtanh.f32 %v597_v29  ;;  %v3345_v33 = vmul.f32 -1.442695, %v597_v29 }
 0x6b4   :  { %3865 = vpow2.f32 %v3345_v33 }
 0x6bc   :  { %v3864_v30 = vpop.eup %3863 }
 0x6bd   :  { %610 = vrot.lane.b32.xlu0 %v3864_v30, %s4127_s6 }
 0x6be   :  { %v3866_v36 = vpop.eup %3865 }
 0x6bf   :  { %v601_v37 = vadd.f32 1.0, %v3866_v36 }
 0x6c1   :  { %3867 = vrcp.f32 %v601_v37 }
 0x6cb   :  { %v3868_v38 = vpop.eup %3867 }
 0x6cc   :  { %v608_v42 = vmul.f32 %v3868_v38, %v606_v41 }
 0x72f   :  { %v611_v39 = vpop.permute.xlu0 %610 }
 0x730   :  { %v613_v40 = vmul.f32 %v3868_v38, %v611_v39 }
 0x732   :  { %615 = vrot.lane.b32.xlu1 %v613_v40, %s4128_s26 }
 0x7a4   :  { %v616_v43 = vpop.permute.xlu1 %615 }
 0x7a5   :  { %v618_v44 = vadd.f32 %v616_v43, %v608_v42 }
 0x7a7   :  { %3869 = vtanh.f32 %v618_v44  ;;  %v713_v4 = vrot.slane %v618_v44, 6 }
 0x7b1   :  { %v3870_v31 = vpop.eup %3869 }
 0x7b2   :  { %621 = vrot.lane.b32.xlu0 %v3870_v31, %s4127_s6 }
 0x824   :  { %v622_v45 = vpop.permute.xlu0 %621 }
 0x825   :  { %v4398_v46 = vmul.f32 %v3868_v38, %v622_v45 }
 0x827   :  { %v626_v47 = vrot.slane %v4398_v46, 4 }
 0x829   :  { %627 = vrot.lane.b32.xlu1 %v626_v47, %s4128_s26 }
 0x89b   :  { %v628_v48 = vpop.permute.xlu1 %627 }
 0x89c   :  { %3548 = vmatmul.mubr.msk.f32.vlgmr.msra.gmra.mrb[4].mxu1 %vm310_vm10, %v628_v48 }
 0x89d   :  { %3770 = vmatpush3.bf16.msra.mxu1 %v4280_v7  ;;  %3569 = vmatprep.mubr.msk.f32.mxu1 %vm4125_vm4, %v4126_v12 }
 0x89e   :  { %3771 = vmatprep.subr.bf16.mxu1 %v4124_v8 }
 0x8a1   :  { %3773 = vmatpush3.bf16.msra.mxu1 %v4291_v11 }
 0x8a2   :  { %3780 = vmatprep.subr.bf16.mxu1 %v4124_v8 }
 0x96f   :  { %v697_v49 = vpop.f32.mrb[4].mxu1 }
 0x970   :  { %v702_v50 = vrot.slane %v697_v49, 2  ;;  %v3549_v51 = vpop.f32.mrb[5].mxu1 }
 0x972   :  { %v704_v52 = vadd.f32 %v702_v50, %v4315_v32 }
 0x974   :  { %3871 = vtanh.f32 %v704_v52  ;;  %v3347_v54 = vmul.f32 -1.442695, %v704_v52 }
 0x976   :  { %3873 = vpow2.f32 %v3347_v54 }
 0x97e   :  { %v3872_v53 = vpop.eup %3871 }
 0x97f   :  { %717 = vrot.lane.b32.xlu0 %v3872_v53, %s4127_s6 }
 0x980   :  { %v3874_v56 = vpop.eup %3873 }
 0x981   :  { %v708_v61 = vadd.f32 1.0, %v3874_v56 }
 0x983   :  { %3875 = vrcp.f32 %v708_v61 }
 0x98d   :  { %v3876_v1 = vpop.eup %3875 }
 0x98e   :  { %v715_v5 = vmul.f32 %v3876_v1, %v713_v4 }
 0x9f1   :  { %v718_v2 = vpop.permute.xlu0 %717 }
 0x9f2   :  { %v720_v3 = vmul.f32 %v3876_v1, %v718_v2  ;;  %v1223_v2 = vld [vmem:[#allocation7 + $0x8] sm:$0xff] }
 0x9f4   :  { %722 = vrot.lane.b32.xlu1 %v720_v3, %s4128_s26 }
 0xa66   :  { %v723_v6 = vpop.permute.xlu1 %722 }
 0xa67   :  { %v725_v9 = vadd.f32 %v723_v6, %v715_v5  ;;  %v4467_v5 = vadd.f32 %v4358_v59, %v4356_v58 }
 0xa69   :  { %3877 = vtanh.f32 %v725_v9  ;;  %v821_v28 = vrot.slane %v725_v9, 6  ;;  %v4472_v6 = vmul.f32 %v1230_v60, %v4467_v5  ;;  %v4476_v9 = vmul.f32 %v4354_v57, %v4362_v62 }
 0xa73   :  { %v3878_v32 = vpop.eup %3877 }
 0xa74   :  { %728 = vrot.lane.b32.xlu0 %v3878_v32, %s4127_s6  ;;  %v1234_v32 = vrot.slane %v4472_v6, 6 }
 0xae6   :  { %v729_v10 = vpop.permute.xlu0 %728 }
 0xae7   :  { %v4413_v14 = vmul.f32 %v3876_v1, %v729_v10  ;;  %v1222_v1 = vld [vmem:[#allocation7] sm:$0xff] }
 0xae8   :  { %v4453_v3 = vpack.c.bf16 %v1223_v2, %v1222_v1 }
 0xae9   :  { %v737_v15 = vrot.slane %v4413_v14, 6 }
 0xaeb   :  { %738 = vrot.lane.b32.xlu1 %v737_v15, %s4128_s26 }
 0xb5d   :  { %v4417_v16 = vpop.permute.xlu1 %738 }
 0xb5e   :  { %3559 = vmatmul.mubr.msk.f32.vlgmr.msra.gmra.mrb[6].mxu0 %vm310_vm10, %v4417_v16 }
 0xb5f   :  { %3776 = vmatpush3.bf16.msra.mxu0 %v4280_v7  ;;  %3580 = vmatprep.mubr.msk.f32.mxu0 %vm4125_vm4, %v4126_v12 }
 0xb60   :  { %3777 = vmatprep.subr.bf16.mxu0 %v4124_v8 }
 0xb63   :  { %3779 = vmatpush3.bf16.msra.mxu0 %v4291_v11 }
 0xb64   :  { %3786 = vmatprep.subr.bf16.mxu0 %v4124_v8 }
 0xc31   :  { %v808_v17 = vpop.f32.mrb[6].mxu0 }
 0xc32   :  { %v812_v18 = vadd.f32 %v808_v17, %v4317_v34  ;;  %v3560_v19 = vpop.f32.mrb[7].mxu0 }
 0xc33   :  { %v4481_v19 = vadd.f32 %v1234_v32, %v4476_v9 }
 0xc34   :  { %3879 = vtanh.f32 %v812_v18  ;;  %v3349_v21 = vmul.f32 -1.442695, %v812_v18 }
 0xc36   :  { %3881 = vpow2.f32 %v3349_v21 }
 0xc3e   :  { %v3880_v20 = vpop.eup %3879 }
 0xc3f   :  { %825 = vrot.lane.b32.xlu0 %v3880_v20, %s4127_s6 }
 0xc40   :  { %v3882_v22 = vpop.eup %3881 }
 0xc41   :  { %v816_v24 = vadd.f32 1.0, %v3882_v22 }
 0xc43   :  { %3883 = vrcp.f32 %v816_v24 }
 0xc4d   :  { %v3884_v25 = vpop.eup %3883 }
 0xc4e   :  { %v823_v29 = vmul.f32 %v3884_v25, %v821_v28 }
 0xcb1   :  { %v826_v26 = vpop.permute.xlu0 %825 }
 0xcb2   :  { %v828_v27 = vmul.f32 %v3884_v25, %v826_v26 }
 0xcb4   :  { %830 = vrot.lane.b32.xlu1 %v828_v27, %s4128_s26 }
 0xd26   :  { %v831_v30 = vpop.permute.xlu1 %830 }
 0xd27   :  { %v833_v33 = vadd.f32 %v831_v30, %v823_v29 }
 0xd29   :  { %3885 = vtanh.f32 %v833_v33 }
 0xd33   :  { %v3886_v36 = vpop.eup %3885 }
 0xd34   :  { %836 = vrot.lane.b32.xlu0 %v3886_v36, %s4127_s6 }
 0xda6   :  { %v837_v37 = vpop.permute.xlu0 %836 }
 0xda7   :  { %v4431_v38 = vmul.f32 %v3884_v25, %v837_v37 }
 0xda9   :  { %844 = vrot.lane.b32.xlu1 %v4431_v38, %s4128_s26 }
 0xe1b   :  { %v4435_v39 = vpop.permute.xlu1 %844 }
 0xe1c   :  { %3570 = vmatmul.mubr.msk.f32.vlgmr.msra.gmra.mrb[6].mxu1 %vm310_vm10, %v4435_v39 }
 0xe1d   :  { %3782 = vmatpush3.bf16.msra.mxu1 %v4280_v7  ;;  %3591 = vmatprep.mubr.msk.f32.mxu1 %vm4125_vm4, %v4126_v12 }
 0xe1e   :  { %3783 = vmatprep.subr.bf16.mxu1 %v4124_v8 }
 0xe21   :  { %3785 = vmatpush3.bf16.msra.mxu1 %v4291_v11  ;;  %v930_v11 = vrot.slane %v833_v33, 6 }
 0xe22   :  { %3789 = vmatprep.subr.bf16.mxu1 %v4124_v8 }
 0xeef   :  { %v914_v40 = vpop.f32.mrb[6].mxu1 }
 0xef0   :  { %v919_v41 = vrot.slane %v914_v40, 6  ;;  %v3571_v42 = vpop.f32.mrb[7].mxu1 }
 0xef2   :  { %v921_v43 = vadd.f32 %v919_v41, %v4319_v35 }
 0xef4   :  { %3887 = vtanh.f32 %v921_v43  ;;  %v3351_v31 = vmul.f32 -1.442695, %v921_v43 }
 0xef6   :  { %3889 = vpow2.f32 %v3351_v31 }
 0xefe   :  { %v3888_v44 = vpop.eup %3887 }
 0xeff   :  { %934 = vrot.lane.b32.xlu0 %v3888_v44, %s4127_s6 }
 0xf00   :  { %v3890_v7 = vpop.eup %3889 }
 0xf01   :  { %v925_v45 = vadd.f32 1.0, %v3890_v7 }
 0xf03   :  { %3891 = vrcp.f32 %v925_v45 }
 0xf0d   :  { %v3892_v47 = vpop.eup %3891 }
 0xf0e   :  { %v932_v50 = vmul.f32 %v3892_v47, %v930_v11 }
 0xf71   :  { %v935_v48 = vpop.permute.xlu0 %934 }
 0xf72   :  { %v937_v49 = vmul.f32 %v3892_v47, %v935_v48 }
 0xf74   :  { %939 = vrot.lane.b32.xlu1 %v937_v49, %s4128_s26 }
 0xfe6   :  { %v940_v51 = vpop.permute.xlu1 %939 }
 0xfe7   :  { %v942_v52 = vadd.f32 %v940_v51, %v932_v50 }
 0xfe9   :  { %3893 = vtanh.f32 %v942_v52  ;;  %v1037_v37 = vrot.slane %v942_v52, 6 }
 0xff3   :  { %v3894_v53 = vpop.eup %3893 }
 0xff4   :  { %945 = vrot.lane.b32.xlu0 %v3894_v53, %s4127_s6 }
0x1066   :  { %v946_v54 = vpop.permute.xlu0 %945 }
0x1067   :  { %v4449_v56 = vmul.f32 %v3892_v47, %v946_v54  ;;  %v1334_v54 = vrot.slane %v4472_v6, 2 }
0x1069   :  { %v950_v61 = vrot.slane %v4449_v56, 2  ;;  %v4518_v2 = vadd.f32 %v1334_v54, %v4476_v9 }
0x106b   :  { %951 = vrot.lane.b32.xlu1 %v950_v61, %s4128_s26 }
0x10dd   :  { %v952_v4 = vpop.permute.xlu1 %951 }
0x10de   :  { %3581 = vmatmul.mubr.msk.f32.vlgmr.msra.gmra.mrb[8].mxu0 %vm310_vm10, %v952_v4 }
0x10df   :  { %3788 = vmatpush3.bf16.msra.mxu0 %v4453_v3  ;;  %3598 = vmatprep.mubr.msk.f32.mxu0 %vm4125_vm4, %v4126_v12 }
0x10e0   :  { %3792 = vmatprep.subr.bf16.mxu0 %v4124_v8 }
0x10e2   :  { %3599 = vmatmul.mubr.f32.vlgmr.msra.gmra.mrb[10].mxu0 %v4126_v12 }
0x10e3   :  { %3794 = vmatpush3.bf16.msra.mxu0 %v4453_v3  ;;  %3612 = vmatprep.mubr.msk.f32.mxu0 %vm4125_vm4, %v4126_v12 }
0x10e4   :  { %3798 = vmatprep.subr.bf16.mxu0 %v4124_v8 }
0x11b1   :  { %v1021_v10 = vpop.f32.mrb[8].mxu0 }
0x11b2   :  { %v1026_v15 = vrot.slane %v1021_v10, 4  ;;  %v3582_v17 = vpop.f32.mrb[9].mxu0 }
0x11b4   :  { %v1028_v18 = vadd.f32 %v1026_v15, %v4317_v34 }
0x11b5   :  { %v1305_v58 = vpop.f32.mrb[10].mxu0 }
0x11b6   :  { %3895 = vtanh.f32 %v1028_v18  ;;  %v1309_v59 = vadd.f32 %v1305_v58, %v4481_v19  ;;  %v3600_v60 = vpop.f32.mrb[11].mxu0  ;;  %v3353_v21 = vmul.f32 -1.442695, %v1028_v18 }
0x11b8   :  { %3897 = vtanh.f32 %v1309_v59  ;;  %v3357_v22 = vmul.f32 -1.442695, %v1309_v59 }
0x11b9   :  { %3899 = vpow2.f32 %v3353_v21 }
0x11ba   :  { %3901 = vpow2.f32 %v3357_v22 }
0x11c0   :  { %v3896_v20 = vpop.eup %3895 }
0x11c1   :  { %1041 = vrot.lane.b32.xlu0 %v3896_v20, %s4127_s6 }
0x11c2   :  { %v3898_v62 = vpop.eup %3897 }
0x11c3   :  { %1319 = vrot.lane.b32.xlu1 %v3898_v62, %s4129_s1  ;;  %v3900_v34 = vpop.eup %3899 }
0x11c4   :  { %v3902_v24 = vpop.eup %3901  ;;  %v1032_v25 = vadd.f32 1.0, %v3900_v34 }
0x11c5   :  { %v1313_v26 = vadd.f32 1.0, %v3902_v24 }
0x11c6   :  { %3903 = vrcp.f32 %v1032_v25 }
0x11c7   :  { %3905 = vrcp.f32 %v1313_v26 }
0x11d0   :  { %v3904_v27 = vpop.eup %3903 }
0x11d1   :  { %v3906_v30 = vpop.eup %3905  ;;  %v1039_v40 = vmul.f32 %v3904_v27, %v1037_v37 }
0x11d2   :  { %v1317_v43 = vmul.f32 0.0, %v3906_v30 }
0x1233   :  { %v1042_v28 = vpop.permute.xlu0 %1041 }
0x1234   :  { %v1044_v29 = vmul.f32 %v3904_v27, %v1042_v28 }
0x1235   :  { %v1320_v33 = vpop.permute.xlu1 %1319 }
0x1236   :  { %1046 = vrot.lane.b32.xlu0 %v1044_v29, %s4128_s26  ;;  %v1322_v36 = vmul.f32 %v3906_v30, %v1320_v33 }
0x1238   :  { %1324 = vrot.lane.b32.xlu1 %v1322_v36, %s4130_s7 }
0x12a8   :  { %v1047_v41 = vpop.permute.xlu0 %1046 }
0x12a9   :  { %v4488_v42 = vadd.f32 %v1047_v41, %v1039_v40 }
0x12aa   :  { %v1325_v44 = vpop.permute.xlu1 %1324 }
0x12ab   :  { %3907 = vtanh.f32 %v4488_v42  ;;  %v1327_v31 = vadd.f32 %v1325_v44, %v1317_v43 }
0x12ad   :  { %3909 = vtanh.f32 %v1327_v31  ;;  %v1424_v9 = vrot.slane %v1327_v31, 6 }
0x12b5   :  { %v3908_v7 = vpop.eup %3907 }
0x12b6   :  { %1052 = vrot.lane.b32.xlu0 %v3908_v7, %s4127_s6 }
0x12b7   :  { %v3910_v45 = vpop.eup %3909 }
0x12b8   :  { %1330 = vrot.lane.b32.xlu1 %v3910_v45, %s4128_s26 }
0x1328   :  { %v1053_v47 = vpop.permute.xlu0 %1052 }
0x1329   :  { %v4493_v48 = vmul.f32 %v3904_v27, %v1053_v47 }
0x132a   :  { %v1331_v49 = vpop.permute.xlu1 %1330 }
0x132b   :  { %v1057_v11 = vrot.slane %v4493_v48, 4  ;;  %v4496_v50 = vmul.f32 %v3906_v30, %v1331_v49 }
0x132d   :  { %1058 = vrot.lane.b32.xlu0 %v1057_v11, %s4128_s26  ;;  %1338 = vrot.lane.b32.xlu1 %v4496_v50, %s4131_s9 }
0x139f   :  { %v1059_v51 = vpop.permute.xlu0 %1058  ;;  %v4506_v52 = vpop.permute.xlu1 %1338 }
0x13a0   :  { %3592 = vmatmul.mubr.msk.f32.vlgmr.msra.gmra.mrb[8].mxu1 %vm310_vm10, %v1059_v51 }
0x13a1   :  { %3791 = vmatpush3.bf16.msra.mxu1 %v4453_v3  ;;  %3605 = vmatprep.mubr.msk.f32.mxu1 %vm4125_vm4, %v4126_v12 }
0x13a2   :  { %3795 = vmatprep.subr.bf16.mxu1 %v4124_v8 }
0x13a4   :  { %3606 = vmatmul.mubr.msk.f32.vlgmr.msra.gmra.mrb[10].mxu1 %vm1169_vm11, %v4506_v52 }
0x13a5   :  { %3797 = vmatpush3.bf16.msra.mxu1 %v4453_v3  ;;  %3619 = vmatprep.mubr.msk.f32.mxu1 %vm4125_vm4, %v4126_v12 }
0x13a6   :  { %3801 = vmatprep.subr.bf16.mxu1 %v4124_v8 }
0x1473   :  { %v4514_v53 = vpop.f32.mrb[8].mxu1 }
0x1474   :  { %v3593_v61 = vpop.f32.mrb[9].mxu1 }
0x1477   :  { %v1408_v1 = vpop.f32.mrb[10].mxu1 }
0x1478   :  { %v1413_v4 = vrot.slane %v1408_v1, 6  ;;  %v3607_v32 = vpop.f32.mrb[11].mxu1 }
0x147a   :  { %v1415_v10 = vadd.f32 %v1413_v4, %v4518_v2 }
0x147c   :  { %3911 = vtanh.f32 %v1415_v10  ;;  %v3359_v17 = vmul.f32 -1.442695, %v1415_v10 }
0x147e   :  { %3913 = vpow2.f32 %v3359_v17 }
0x1486   :  { %v3912_v15 = vpop.eup %3911 }
0x1487   :  { %1428 = vrot.lane.b32.xlu0 %v3912_v15, %s4129_s1 }
0x1488   :  { %v3914_v18 = vpop.eup %3913 }
0x1489   :  { %v1419_v58 = vadd.f32 1.0, %v3914_v18 }
0x148b   :  { %3915 = vrcp.f32 %v1419_v58 }
0x1495   :  { %v3916_v59 = vpop.eup %3915 }
0x1496   :  { %v1426_v20 = vmul.f32 %v3916_v59, %v1424_v9 }
0x14f9   :  { %v1429_v6 = vpop.permute.xlu0 %1428 }
0x14fa   :  { %v1431_v60 = vmul.f32 %v3916_v59, %v1429_v6 }
0x14fc   :  { %1433 = vrot.lane.b32.xlu1 %v1431_v60, %s4130_s7 }
0x156e   :  { %v1434_v62 = vpop.permute.xlu1 %1433 }
0x156f   :  { %v1436_v21 = vadd.f32 %v1434_v62, %v1426_v20 }
0x1571   :  { %3917 = vtanh.f32 %v1436_v21  ;;  %v1531_v31 = vrot.slane %v1436_v21, 6 }
0x157b   :  { %v3918_v22 = vpop.eup %3917 }
0x157c   :  { %1439 = vrot.lane.b32.xlu0 %v3918_v22, %s4128_s26 }
0x15ee   :  { %v1440_v34 = vpop.permute.xlu0 %1439 }
0x15ef   :  { %v4524_v24 = vmul.f32 %v3916_v59, %v1440_v34 }
0x15f1   :  { %v1444_v25 = vrot.slane %v4524_v24, 2 }
0x15f3   :  { %1445 = vrot.lane.b32.xlu1 %v1444_v25, %s4131_s9 }
0x1665   :  { %v1446_v26 = vpop.permute.xlu1 %1445 }
0x1666   :  { %3613 = vmatmul.mubr.msk.f32.vlgmr.msra.gmra.mrb[12].mxu0 %vm1169_vm11, %v1446_v26  ;;  %v1229_v26 = vmul.f32 %v4354_v57, %v4467_v5 }
0x1667   :  { %3800 = vmatpush3.bf16.msra.mxu0 %v4453_v3  ;;  %3626 = vmatprep.mubr.msk.f32.mxu0 %vm4125_vm4, %v4126_v12 }
0x1668   :  { %3804 = vmatprep.subr.bf16.mxu0 %v4124_v8 }
0x1739   :  { %v1515_v27 = vpop.f32.mrb[12].mxu0 }
0x173a   :  { %v1520_v28 = vrot.slane %v1515_v27, 4  ;;  %v3614_v29 = vpop.f32.mrb[13].mxu0  ;;  %v1658_v27 = vrot.slane %v4367_v63, 6 }
0x173c   :  { %v1522_v30 = vadd.f32 %v1520_v28, %v4481_v19  ;;  %v4565_v28 = vadd.f32 %v1658_v27, %v1229_v26 }
0x173e   :  { %3919 = vtanh.f32 %v1522_v30  ;;  %v3361_v36 = vmul.f32 -1.442695, %v1522_v30 }
0x1740   :  { %3921 = vpow2.f32 %v3361_v36 }
0x1748   :  { %v3920_v33 = vpop.eup %3919 }
0x1749   :  { %1535 = vrot.lane.b32.xlu0 %v3920_v33, %s4129_s1 }
0x174a   :  { %v3922_v37 = vpop.eup %3921 }
0x174b   :  { %v1526_v40 = vadd.f32 1.0, %v3922_v37 }
0x174d   :  { %3923 = vrcp.f32 %v1526_v40 }
0x1757   :  { %v3924_v41 = vpop.eup %3923 }
0x1758   :  { %v1533_v7 = vmul.f32 %v3924_v41, %v1531_v31 }
0x17bb   :  { %v1536_v43 = vpop.permute.xlu0 %1535 }
0x17bc   :  { %v1538_v44 = vmul.f32 %v3924_v41, %v1536_v43 }
0x17be   :  { %1540 = vrot.lane.b32.xlu1 %v1538_v44, %s4130_s7 }
0x1830   :  { %v1541_v45 = vpop.permute.xlu1 %1540 }
0x1831   :  { %v1543_v47 = vadd.f32 %v1541_v45, %v1533_v7 }
0x1833   :  { %3925 = vtanh.f32 %v1543_v47  ;;  %v1638_v60 = vrot.slane %v1543_v47, 6 }
0x183d   :  { %v3926_v19 = vpop.eup %3925 }
0x183e   :  { %1546 = vrot.lane.b32.xlu0 %v3926_v19, %s4128_s26 }
0x18b0   :  { %v1547_v49 = vpop.permute.xlu0 %1546 }
0x18b1   :  { %v4537_v11 = vmul.f32 %v3924_v41, %v1547_v49 }
0x18b3   :  { %v1551_v51 = vrot.slane %v4537_v11, 4 }
0x18b5   :  { %1552 = vrot.lane.b32.xlu1 %v1551_v51, %s4131_s9 }
0x1927   :  { %v1553_v54 = vpop.permute.xlu1 %1552 }
0x1928   :  { %3620 = vmatmul.mubr.msk.f32.vlgmr.msra.gmra.mrb[12].mxu1 %vm1169_vm11, %v1553_v54  ;;  %v1765_v54 = vrot.slane %v4367_v63, 2 }
0x1929   :  { %3803 = vmatpush3.bf16.msra.mxu1 %v4453_v3  ;;  %3633 = vmatprep.mubr.msk.f32.mxu1 %vm4125_vm4, %v4126_v12 }
0x192a   :  { %3807 = vmatprep.subr.bf16.mxu1 %v4124_v8 }
0x19fb   :  { %v1622_v61 = vpop.f32.mrb[12].mxu1 }
0x19fc   :  { %v1627_v1 = vrot.slane %v1622_v61, 2  ;;  %v3621_v4 = vpop.f32.mrb[13].mxu1 }
0x19fe   :  { %v1629_v32 = vadd.f32 %v1627_v1, %v4518_v2  ;;  %v4584_v1 = vadd.f32 %v1765_v54, %v1229_v26 }
0x1a00   :  { %3927 = vtanh.f32 %v1629_v32  ;;  %v3363_v15 = vmul.f32 -1.442695, %v1629_v32 }
0x1a02   :  { %3929 = vpow2.f32 %v3363_v15 }
0x1a0a   :  { %v3928_v10 = vpop.eup %3927 }
0x1a0b   :  { %1642 = vrot.lane.b32.xlu0 %v3928_v10, %s4129_s1 }
0x1a0c   :  { %v3930_v17 = vpop.eup %3929 }
0x1a0d   :  { %v1633_v18 = vadd.f32 1.0, %v3930_v17 }
0x1a0f   :  { %3931 = vrcp.f32 %v1633_v18 }
0x1a19   :  { %v3932_v58 = vpop.eup %3931 }
0x1a1a   :  { %v1640_v9 = vmul.f32 %v3932_v58, %v1638_v60  ;;  %v1133_v60 = vrot.slane %v4514_v53, 2 }
0x1a7d   :  { %v1643_v59 = vpop.permute.xlu0 %1642 }
0x1a7e   :  { %v1645_v6 = vmul.f32 %v3932_v58, %v1643_v59 }
0x1a80   :  { %1647 = vrot.lane.b32.xlu1 %v1645_v6, %s4130_s7 }
0x1af2   :  { %v1648_v20 = vpop.permute.xlu1 %1647 }
0x1af3   :  { %v1650_v62 = vadd.f32 %v1648_v20, %v1640_v9 }
0x1af5   :  { %3933 = vtanh.f32 %v1650_v62  ;;  %v1746_v5 = vrot.slane %v1650_v62, 6 }
0x1aff   :  { %v3934_v2 = vpop.eup %3933 }
0x1b00   :  { %1653 = vrot.lane.b32.xlu0 %v3934_v2, %s4128_s26  ;;  %v1135_v2 = vadd.f32 %v1133_v60, %v4319_v35 }
0x1b02   :  { %v3355_v26 = vmul.f32 -1.442695, %v1135_v2 }
0x1b72   :  { %v1654_v21 = vpop.permute.xlu0 %1653 }
0x1b73   :  { %v4550_v22 = vmul.f32 %v3932_v58, %v1654_v21 }
0x1b75   :  { %v1662_v34 = vrot.slane %v4550_v22, 6 }
0x1b77   :  { %1663 = vrot.lane.b32.xlu1 %v1662_v34, %s4131_s9 }
0x1be9   :  { %v4554_v25 = vpop.permute.xlu1 %1663 }
0x1bea   :  { %3627 = vmatmul.mubr.msk.f32.vlgmr.msra.gmra.mrb[14].mxu0 %vm1169_vm11, %v4554_v25 }
0x1beb   :  { %3806 = vmatpush3.bf16.msra.mxu0 %v4453_v3  ;;  %3640 = vmatprep.mubr.msk.f32.mxu0 %vm4125_vm4, %v4126_v12 }
0x1bec   :  { %3810 = vmatprep.subr.bf16.mxu0 %v4124_v8 }
0x1cbd   :  { %v1733_v29 = vpop.f32.mrb[14].mxu0 }
0x1cbe   :  { %v1737_v30 = vadd.f32 %v1733_v29, %v4565_v28  ;;  %v3628_v33 = vpop.f32.mrb[15].mxu0 }
0x1cc0   :  { %3935 = vtanh.f32 %v1737_v30  ;;  %v3365_v37 = vmul.f32 -1.442695, %v1737_v30 }
0x1cc2   :  { %3937 = vpow2.f32 %v3365_v37 }
0x1cca   :  { %v3936_v36 = vpop.eup %3935 }
0x1ccb   :  { %1750 = vrot.lane.b32.xlu0 %v3936_v36, %s4129_s1 }
0x1ccc   :  { %v3938_v40 = vpop.eup %3937 }
0x1ccd   :  { %v1741_v41 = vadd.f32 1.0, %v3938_v40 }
0x1ccf   :  { %3939 = vrcp.f32 %v1741_v41  ;;  %v1144_v41 = vrot.slane %v4488_v42, 6 }
0x1cd9   :  { %v3940_v43 = vpop.eup %3939 }
0x1cda   :  { %v1748_v31 = vmul.f32 %v3940_v43, %v1746_v5 }
0x1d3d   :  { %v1751_v44 = vpop.permute.xlu0 %1750 }
0x1d3e   :  { %v1753_v57 = vmul.f32 %v3940_v43, %v1751_v44 }
0x1d40   :  { %1755 = vrot.lane.b32.xlu1 %v1753_v57, %s4130_s7 }
0x1db2   :  { %v1756_v7 = vpop.permute.xlu1 %1755 }
0x1db3   :  { %v1758_v45 = vadd.f32 %v1756_v7, %v1748_v31  ;;  %v1174_v31 = vrot.slane %v4493_v48, 2  ;;  %v1182_v7 = vrot.slane %v4449_v56, 6 }
0x1db5   :  { %3941 = vtanh.f32 %v1758_v45  ;;  %v1855_v63 = vrot.slane %v1758_v45, 6 }
0x1dbf   :  { %v3942_v47 = vpop.eup %3941 }
0x1dc0   :  { %1761 = vrot.lane.b32.xlu0 %v3942_v47, %s4128_s26  ;;  %v2149_v47 = vld [vmem:[%s4892_s10] sm:$0xff] }
0x1e32   :  { %v1762_v19 = vpop.permute.xlu0 %1761 }
0x1e33   :  { %v4571_v49 = vmul.f32 %v3940_v43, %v1762_v19  ;;  %v2150_v19 = vld [vmem:[%s4892_s10 + $0x8] sm:$0xff] }
0x1e35   :  { %1769 = vrot.lane.b32.xlu1 %v4571_v49, %s4131_s9 }
0x1ea7   :  { %v4575_v51 = vpop.permute.xlu1 %1769 }
0x1ea8   :  { %3634 = vmatmul.mubr.msk.f32.vlgmr.msra.gmra.mrb[14].mxu1 %vm1169_vm11, %v4575_v51 }
0x1ea9   :  { %3809 = vmatpush3.bf16.msra.mxu1 %v4453_v3  ;;  %3647 = vmatprep.mubr.msk.f32.mxu1 %vm4125_vm4, %v4126_v12 }
0x1eaa   :  { %3661 = vmatprep.subr.mxu1 %v4126_v12 }
0x1f7b   :  { %v1839_v61 = vpop.f32.mrb[14].mxu1 }
0x1f7c   :  { %v1844_v4 = vrot.slane %v1839_v61, 6  ;;  %v3635_v32 = vpop.f32.mrb[15].mxu1  ;;  %v1190_v61 = vrot.slane %v4431_v38, 2 }
0x1f7d   :  { %v1201_v32 = vrot.slane %v4398_v46, 2 }
0x1f7e   :  { %v1846_v10 = vadd.f32 %v1844_v4, %v4584_v1 }
0x1f80   :  { %3943 = vtanh.f32 %v1846_v10  ;;  %v3367_v17 = vmul.f32 -1.442695, %v1846_v10  ;;  %v1209_v10 = vrot.slane %v4383_v23, 6 }
0x1f82   :  { %3945 = vpow2.f32 %v3367_v17 }
0x1f8a   :  { %v3944_v15 = vpop.eup %3943 }
0x1f8b   :  { %1859 = vrot.lane.b32.xlu0 %v3944_v15, %s4129_s1  ;;  %v1217_v15 = vrot.slane %v4348_v55, 2 }
0x1f8c   :  { %v3946_v3 = vpop.eup %3945 }
0x1f8d   :  { %v1850_v18 = vadd.f32 1.0, %v3946_v3 }
0x1f8f   :  { %3947 = vrcp.f32 %v1850_v18 }
0x1f99   :  { %v3948_v58 = vpop.eup %3947 }
0x1f9a   :  { %v1857_v9 = vmul.f32 %v3948_v58, %v1855_v63 }
0x1ffd   :  { %v1860_v59 = vpop.permute.xlu0 %1859 }
0x1ffe   :  { %v1862_v6 = vmul.f32 %v3948_v58, %v1860_v59 }
0x2000   :  { %1864 = vrot.lane.b32.xlu1 %v1862_v6, %s4130_s7 }
0x2072   :  { %v1865_v20 = vpop.permute.xlu1 %1864 }
0x2073   :  { %v4590_v62 = vadd.f32 %v1865_v20, %v1857_v9 }
0x2075   :  { %3949 = vtanh.f32 %v4590_v62 }
0x2076   :  { %3951 = vtanh.f32 %v1135_v2 }
0x2077   :  { %3953 = vpow2.f32 %v3355_v26 }
0x207f   :  { %v3950_v21 = vpop.eup %3949 }
0x2080   :  { %1870 = vrot.lane.b32.xlu0 %v3950_v21, %s4128_s26  ;;  %v3952_v34 = vpop.eup %3951 }
0x2081   :  { %v3954_v27 = vpop.eup %3953 }
0x2082   :  { %v1139_v29 = vadd.f32 1.0, %v3954_v27 }
0x2084   :  { %1148 = vrot.lane.b32.xlu0 %v3952_v34, %s4127_s6  ;;  %3955 = vrcp.f32 %v1139_v29 }
0x208e   :  { %v3956_v36 = vpop.eup %3955 }
0x208f   :  { %v1146_v43 = vmul.f32 %v3956_v36, %v1144_v41 }
0x20f2   :  { %v1871_v53 = vpop.permute.xlu0 %1870 }
0x20f3   :  { %v4596_v30 = vmul.f32 %v3948_v58, %v1871_v53 }
0x20f5   :  { %v1875_v33 = vrot.slane %v4596_v30, 2 }
0x20f6   :  { %v1149_v35 = vpop.permute.xlu0 %1148 }
0x20f7   :  { %1876 = vrot.lane.b32.xlu1 %v1875_v33, %s4131_s9  ;;  %v1151_v37 = vmul.f32 %v3956_v36, %v1149_v35  ;;  %v1197_v35 = vsel %vm1169_vm11, %v4435_v39, %v4417_v16 }
0x20fb   :  { %1153 = vrot.lane.b32.xlu1 %v1151_v37, %s4128_s26 }
0x20ff   :  { %1171 = vrot.lane.b32.xlu1 %v4383_v23, %s4128_s26 }
0x2103   :  { %1179 = vrot.lane.b32.xlu1 %v4398_v46, %s4128_s26 }
0x2169   :  { %v1877_v40 = vpop.permute.xlu1 %1876 }
0x216a   :  { %3641 = vmatmul.mubr.msk.f32.vlgmr.msra.gmra.mrb[16].mxu0 %vm1169_vm11, %v1877_v40 }
0x216b   :  { %3658 = vmatprep.mubr.msk.f32.mxu0 %vm4125_vm4, %v4126_v12 }
0x216d   :  { %v1154_v44 = vpop.permute.xlu1 %1153 }
0x216e   :  { %v1156_v57 = vadd.f32 %v1154_v44, %v1146_v43 }
0x2170   :  { %3957 = vtanh.f32 %v1156_v57 }
0x2171   :  { %v1172_v59 = vpop.permute.xlu1 %1171 }
0x2175   :  { %v1180_v6 = vpop.permute.xlu1 %1179 }
0x217a   :  { %v3958_v5 = vpop.eup %3957 }
0x217b   :  { %1159 = vrot.lane.b32.xlu0 %v3958_v5, %s4127_s6  ;;  %v2165_v5 = vrot.slane %v1197_v35, 4 }
0x217f   :  { %1175 = vrot.lane.b32.xlu0 %v1174_v31, %s4128_s26 }
0x2183   :  { %1183 = vrot.lane.b32.xlu0 %v1182_v7, %s4128_s26 }
0x2187   :  { %1187 = vrot.lane.b32.xlu0 %v4413_v14, %s4128_s26  ;;  %v4627_v14 = vpack.c.bf16 %v2150_v19, %v2149_v47 }
0x2189   :  { %3812 = vmatpush3.bf16.msra.mxu0 %v4627_v14 }
0x218a   :  { %3813 = vmatprep.subr.bf16.mxu0 %v4124_v8 }
0x218b   :  { %1198 = vrot.lane.b32.xlu0 %v4449_v56, %s4128_s26  ;;  %v2151_v56 = vld [vmem:[%s4892_s10 + $0x10] sm:$0xff] }
0x218f   :  { %1206 = vrot.lane.b32.xlu0 %v4493_v48, %s4128_s26  ;;  %v2152_v48 = vld [vmem:[%s4892_s10 + $0x18] sm:$0xff] }
0x2190   :  { %v4639_v4 = vpack.c.bf16 %v2152_v48, %v2151_v56 }
0x2192   :  { %3815 = vmatpush3.bf16.msra.mxu0 %v4639_v4 }
0x2193   :  { %3816 = vmatprep.subr.bf16.mxu0 %v4124_v8 }
0x21ed   :  { %v1160_v42 = vpop.permute.xlu0 %1159 }
0x21ee   :  { %v1162_v45 = vmul.f32 %v3956_v36, %v1160_v42 }
0x21f0   :  { %v1165_v54 = vrot.slane %v1162_v45, 6  ;;  %1214 = vrot.lane.b32.xlu0 %v1162_v45, %s4128_s26 }
0x21f1   :  { %v1176_v46 = vpop.permute.xlu0 %1175 }
0x21f2   :  { %1166 = vrot.lane.b32.xlu1 %v1165_v54, %s4128_s26  ;;  %v1178_v9 = vsel %vm1169_vm11, %v1172_v59, %v1176_v46 }
0x21f3   :  { %v2156_v21 = vrot.slane %v1178_v9, 1  ;;  %v2464_v43 = vrot.slane %v1178_v9, 2 }
0x21f5   :  { %v1184_v23 = vpop.permute.xlu0 %1183 }
0x21f6   :  { %1191 = vrot.lane.b32.xlu1 %v1190_v61, %s4128_s26  ;;  %v1186_v34 = vsel %vm1169_vm11, %v1180_v6, %v1184_v23 }
0x21f7   :  { %v2159_v53 = vrot.slane %v1186_v34, 2  ;;  %v2466_v39 = vrot.slane %v1186_v34, 3 }
0x21f9   :  { %v1188_v63 = vpop.permute.xlu0 %1187 }
0x21fa   :  { %1202 = vrot.lane.b32.xlu1 %v1201_v32, %s4128_s26 }
0x21fd   :  { %v1199_v20 = vpop.permute.xlu0 %1198 }
0x21fe   :  { %1210 = vrot.lane.b32.xlu1 %v1209_v10, %s4128_s26 }
0x2201   :  { %v1207_v36 = vpop.permute.xlu0 %1206 }
0x2202   :  { %1218 = vrot.lane.b32.xlu1 %v1217_v15, %s4128_s26 }
0x223d   :  { %v1946_v38 = vpop.f32.mrb[16].mxu0 }
0x223e   :  { %v1951_v17 = vrot.slane %v1946_v38, 4  ;;  %v3642_v3 = vpop.f32.mrb[17].mxu0  ;;  %v2470_v38 = vrot.slane %v1197_v35, 5 }
0x2240   :  { %v4651_v18 = vadd.f32 %v1951_v17, %v4565_v28 }
0x2242   :  { %3959 = vtanh.f32 %v4651_v18 }
0x224c   :  { %v3960_v58 = vpop.eup %3959 }
0x224d   :  { %1966 = vrot.lane.b32.xlu0 %v3960_v58, %s4129_s1 }
0x2262   :  { %v1215_v7 = vpop.permute.xlu0 %1214 }
0x2264   :  { %v1167_v60 = vpop.permute.xlu1 %1166 }
0x2265   :  { %v1170_v28 = vsel %vm1169_vm11, %v4369_v0, %v1167_v60 }
0x2266   :  { %v2177_v27 = vsel %vm2176_vm12, %v1170_v28, %v2156_v21  ;;  %v2462_v37 = vrot.slane %v1170_v28, 1 }
0x2267   :  { %v2178_v40 = vsel %vm212_vm6, %v2177_v27, %v2159_v53  ;;  %v2153_v27 = vld [vmem:[%s4893_s11] sm:$0xff] }
0x2268   :  { %v1192_v55 = vpop.permute.xlu1 %1191  ;;  %v2476_v42 = vsel %vm2176_vm12, %v2462_v37, %v2464_v43 }
0x2269   :  { %v1194_v2 = vsel %vm1169_vm11, %v1188_v63, %v1192_v55  ;;  %v2477_v48 = vsel %vm212_vm6, %v2476_v42, %v2466_v39  ;;  %v1962_v55 = vrot.slane %v4590_v62, 6  ;;  %v2154_v62 = vld [vmem:[%s4893_s11 + $0x8] sm:$0x3] }
0x226a   :  { %v2162_v29 = vrot.slane %v1194_v2, 3  ;;  %v2468_v45 = vrot.slane %v1194_v2, 4 }
0x226c   :  { %v1203_v26 = vpop.permute.xlu1 %1202  ;;  %v2180_v44 = vsel %vm2179_vm13, %v2178_v40, %v2162_v29  ;;  %v2478_v32 = vsel %vm2179_vm13, %v2477_v48, %v2468_v45  ;;  %v2147_v40 = vld [vmem:[#allocation2] sm:$0x3] }
0x226d   :  { %v1205_v33 = vsel %vm1169_vm11, %v1199_v20, %v1203_v26  ;;  %v2181_v47 = vsel %vm115_vm0, %v2180_v44, %v2165_v5  ;;  %v2479_v3 = vsel %vm115_vm0, %v2478_v32, %v2470_v38 }
0x226e   :  { %v2168_v57 = vrot.slane %v1205_v33, 5  ;;  %v2472_v10 = vrot.slane %v1205_v33, 6 }
0x2270   :  { %v1211_v0 = vpop.permute.xlu1 %1210  ;;  %v2183_v54 = vsel %vm2182_vm14, %v2181_v47, %v2168_v57  ;;  %v2480_v58 = vsel %vm2182_vm14, %v2479_v3, %v2472_v10  ;;  %v2115_v47 = vrot.slane %v4571_v49, 2 }
0x2271   :  { %v1213_v41 = vsel %vm1169_vm11, %v1207_v36, %v1211_v0  ;;  %v4725_v0 = vshrl.u32 %v295_v13, 7 }
0x2272   :  { %v2171_v31 = vrot.slane %v1213_v41, 6  ;;  %v2474_v17 = vrot.slane %v1213_v41, 7  ;;  %v4727_v41 = vmul.f32 10000.0, %v2147_v40 }
0x2273   :  { %v2373_v43 = vsub.s32 0, %v4725_v0 }
0x2274   :  { %v1219_v16 = vpop.permute.xlu1 %1218  ;;  %v2185_v61 = vsel %vm2184_vm15, %v2183_v54, %v2171_v31  ;;  %v2481_v46 = vsel %vm2184_vm15, %v2480_v58, %v2474_v17 }
0x2275   :  { %v1221_v19 = vsel %vm1169_vm11, %v1215_v7, %v1219_v16  ;;  %v2374_v31 = vrot.slane %v4727_v41, %v2373_v43 }
0x2276   :  { %v2174_v56 = vrot.slane %v1221_v19, 7  ;;  %v4687_v59 = vsel %vm2186_vm1, %v2481_v46, %v1221_v19  ;;  %v2126_v19 = vrot.slane %v4537_v11, 2 }
0x2278   :  { %v2187_v15 = vsel %vm2186_vm1, %v2185_v61, %v2174_v56 }
0x2279   :  { %3659 = vmatmul.mubr.msk.f32.vlgmr.msra.gmra.mrb[18].mxu0 %vm310_vm10, %v2187_v15 }
0x227a   :  { %3818 = vmatpush3.bf16.msra.mxu0 %v4627_v14  ;;  %3679 = vmatprep.mubr.msk.f32.mxu0 %vm4125_vm4, %v4126_v12  ;;  %v3369_v14 = vmul.f32 -1.442695, %v4651_v18 }
0x227b   :  { %3819 = vmatprep.subr.bf16.mxu0 %v4124_v8 }
0x227c   :  { %3961 = vpow2.f32 %v3369_v14 }
0x227e   :  { %3821 = vmatpush3.bf16.msra.mxu0 %v4639_v4 }
0x227f   :  { %3822 = vmatprep.subr.bf16.mxu0 %v4124_v8 }
0x2281   :  { %3680 = vmatmul.mubr.msk.f32.vlgmr.msra.gmra.mrb[20].mxu0 %vm310_vm10, %v4687_v59 }
0x2282   :  { %3696 = vmatprep.mubr.msk.f32.mxu0 %vm4125_vm4, %v4126_v12 }
0x2286   :  { %v3962_v23 = vpop.eup %3961 }
0x2287   :  { %v1957_v6 = vadd.f32 1.0, %v3962_v23 }
0x2289   :  { %3963 = vrcp.f32 %v1957_v6 }
0x2293   :  { %v3964_v63 = vpop.eup %3963 }
0x2294   :  { %v1964_v9 = vmul.f32 %v3964_v63, %v1962_v55 }
0x22bf   :  { %v1967_v60 = vpop.permute.xlu0 %1966 }
0x22c0   :  { %v1969_v4 = vmul.f32 %v3964_v63, %v1967_v60 }
0x22c2   :  { %1971 = vrot.lane.b32.xlu1 %v1969_v4, %s4130_s7 }
0x2334   :  { %v1972_v20 = vpop.permute.xlu1 %1971 }
0x2335   :  { %v4696_v28 = vadd.f32 %v1972_v20, %v1964_v9  ;;  %v2107_v20 = vrot.slane %v4596_v30, 6 }
0x2337   :  { %3965 = vtanh.f32 %v4696_v28  ;;  %v2069_v46 = vrot.slane %v4696_v28, 6 }
0x2341   :  { %v3966_v2 = vpop.eup %3965 }
0x2342   :  { %1977 = vrot.lane.b32.xlu0 %v3966_v2, %s4128_s26  ;;  %v2142_v2 = vrot.slane %v4496_v50, 2 }
0x234c   :  { %v2257_v18 = vpop.f32.mrb[18].mxu0 }
0x234d   :  { %v3660_v21 = vpop.f32.mrb[19].mxu0  ;;  %3967 = vtanh.f32 %v2257_v18 }
0x2354   :  { %v4700_v34 = vpop.f32.mrb[20].mxu0 }
0x2355   :  { %v3681_v26 = vpop.f32.mrb[21].mxu0 }
0x2357   :  { %v3968_v36 = vpop.eup %3967 }
0x2360   :  { %2262 = vxpose.xlu0.b32.start [1/2] (short) (narrow) %v2153_v27, 8 }
0x2364   :  { %2263 = vxpose.xlu0.b32.end [2/2] (short) (narrow) %v2154_v62, 8 }
0x23b4   :  { %v1978_v29 = vpop.permute.xlu0 %1977 }
0x23b5   :  { %v4708_v53 = vmul.f32 %v3964_v63, %v1978_v29 }
0x23b7   :  { %v1982_v33 = vrot.slane %v4708_v53, 4  ;;  %v2099_v9 = vrot.slane %v4708_v53, 2 }
0x23b9   :  { %1983 = vrot.lane.b32.xlu1 %v1982_v33, %s4131_s9 }
0x23e0   :  { %v4716_v37 = vpop.trf.xlu0 }
0x242b   :  { %v1984_v35 = vpop.permute.xlu1 %1983 }
0x242c   :  { %3648 = vmatmul.mubr.msk.f32.vlgmr.msra.gmra.mrb[16].mxu1 %vm1169_vm11, %v1984_v35 }
0x242d   :  { %3662 = vmatpush3.xpose.msk.msra.mxu1 %vm205_vm8, %v3968_v36  ;;  %3663 = vmatprep.mubr.msk.f32.mxu1 %vm4125_vm4, %v4126_v12 }
0x242e   :  { %3666 = vmatprep.subr.mxu1 %v4126_v12 }
0x2430   :  { %3664 = vmatmul.mubr.msk.f32.vlgmr.msra.gmra.mrb[18].mxu1 %vm205_vm8, %v4716_v37 }
0x2431   :  { %3667 = vmatpush3.msra.mxu1 %v2187_v15  ;;  %3668 = vmatprep.mubr.msk.f32.mxu1 %vm4125_vm4, %v4126_v12 }
0x2432   :  { %3682 = vmatprep.subr.mxu1 %v4126_v12 }
0x24ff   :  { %v2053_v44 = vpop.f32.mrb[16].mxu1 }
0x2500   :  { %v2058_v57 = vrot.slane %v2053_v44, 2  ;;  %v3649_v5 = vpop.f32.mrb[17].mxu1 }
0x2502   :  { %v2060_v7 = vadd.f32 %v2058_v57, %v4584_v1  ;;  %v2134_v1 = vrot.slane %v4524_v24, 6 }
0x2503   :  { %v2366_v42 = vpop.f32.mrb[18].mxu1 }
0x2504   :  { %3969 = vtanh.f32 %v2060_v7  ;;  %v2375_v45 = vsub.f32 %v2366_v42, %v2374_v31  ;;  %v3665_v13 = vpop.f32.mrb[19].mxu1  ;;  %v3371_v54 = vmul.f32 -1.442695, %v2060_v7 }
0x2506   :  { %v2377_v16 = vsel %vm2376_vm2, %v2375_v45, -inf  ;;  %3971 = vpow2.f32 %v3371_v54 }
0x2507   :  { %2378 = vmax.xlane.f32.xlu1 %v2377_v16 }
0x250e   :  { %v3970_v39 = vpop.eup %3969 }
0x250f   :  { %2073 = vrot.lane.b32.xlu0 %v3970_v39, %s4129_s1 }
0x2510   :  { %v3972_v32 = vpop.eup %3971 }
0x2511   :  { %v2064_v15 = vadd.f32 1.0, %v3972_v32 }
0x2513   :  { %2116 = vrot.lane.b32.xlu0 %v2115_v47, %s4131_s9 }
0x2517   :  { %2127 = vrot.lane.b32.xlu0 %v2126_v19, %s4131_s9 }
0x251b   :  { %2135 = vrot.lane.b32.xlu0 %v2134_v1, %s4131_s9 }
0x2581   :  { %v2074_v38 = vpop.permute.xlu0 %2073 }
0x2594   :  { %v2379_v56 = vpop.xlane.xlu1 %2378 }
0x2595   :  { %v2380_v48 = vsub.f32 %v2375_v45, %v2379_v56 }
0x2597   :  { %v2381_v61 = vmul.f32 1.442695, %v2380_v48 }
0x2599   :  { %3973 = vpow2.f32 %v2381_v61 }
0x259a   :  { %3975 = vrcp.f32 %v2064_v15 }
0x25a3   :  { %v3974_v10 = vpop.eup %3973 }
0x25a4   :  { %v2383_v49 = vsel %vm2376_vm2, %v3974_v10, 0.0  ;;  %v3976_v17 = vpop.eup %3975 }
0x25a5   :  { %2384 = vadd.xlane.f32.xlu1 %v2383_v49  ;;  %v2076_v3 = vmul.f32 %v3976_v17, %v2074_v38  ;;  %v2071_v14 = vmul.f32 %v3976_v17, %v2069_v46 }
0x25b6   :  { %2078 = vrot.lane.b32.xlu1 %v2076_v3, %s4130_s7 }
0x2632   :  { %v2385_v58 = vpop.xlane.xlu1 %2384 }
0x2633   :  { %3977 = vrcp.f32 %v2385_v58 }
0x2634   :  { %3979 = vtanh.f32 %v4700_v34  ;;  %v2632_v34 = vsub.s32 1, %v4725_v0 }
0x2636   :  { %v2079_v23 = vpop.permute.xlu1 %2078  ;;  %v2633_v29 = vrot.slane %v4727_v41, %v2632_v34  ;;  %v2122_v41 = vsel %vm2094_vm3, %v4575_v51, %v4554_v25 }
0x2637   :  { %v2081_v6 = vadd.f32 %v2079_v23, %v2071_v14  ;;  %v2733_v32 = vrot.slane %v2122_v41, 4 }
0x2639   :  { %3981 = vtanh.f32 %v2081_v6 }
0x263d   :  { %v3978_v63 = vpop.eup %3977 }
0x263e   :  { %v4746_v60 = vmul.f32 %v3978_v63, %v3974_v10  ;;  %v3980_v4 = vpop.eup %3979  ;;  %v3032_v10 = vrot.slane %v2122_v41, 5 }
0x2640   :  { %3669 = vmatmul.mubr.msk.f32.vlgmr.msra.gmra.mrb[20].mxu1 %vm2094_vm3, %v4746_v60 }
0x2641   :  { %3683 = vmatpush3.xpose.msk.msra.mxu1 %vm205_vm8, %v3980_v4  ;;  %3684 = vmatprep.mubr.msk.f32.mxu1 %vm4125_vm4, %v4126_v12 }
0x2642   :  { %3687 = vmatprep.subr.mxu1 %v4126_v12 }
0x2643   :  { %v3982_v55 = vpop.eup %3981 }
0x2644   :  { %3685 = vmatmul.mubr.msk.f32.vlgmr.msra.gmra.mrb[22].mxu1 %vm205_vm8, %v4716_v37  ;;  %2084 = vrot.lane.b32.xlu1 %v3982_v55, %s4128_s26  ;;  %v2117_v37 = vpop.permute.xlu0 %2116 }
0x2645   :  { %3688 = vmatpush3.msra.mxu1 %v4687_v59  ;;  %3689 = vmatprep.mubr.msk.f32.mxu1 %vm4125_vm4, %v4126_v12 }
0x2646   :  { %3699 = vmatprep.subr.mxu1 %v4126_v12 }
0x2648   :  { %2096 = vrot.lane.b32.xlu1 %v4524_v24, %s4131_s9  ;;  %v2719_v24 = vld [vmem:[%s4894_s12] sm:$0xff]  ;;  %v2128_v44 = vpop.permute.xlu0 %2127 }
0x264c   :  { %2100 = vrot.lane.b32.xlu1 %v2099_v9, %s4131_s9  ;;  %v2136_v5 = vpop.permute.xlu0 %2135 }
0x2650   :  { %2104 = vrot.lane.b32.xlu1 %v4537_v11, %s4131_s9  ;;  %v2720_v11 = vld [vmem:[%s4894_s12 + $0x8] sm:$0xff] }
0x2651   :  { %v4781_v59 = vpack.c.bf16 %v2720_v11, %v2719_v24 }
0x2653   :  { %3824 = vmatpush3.bf16.msra.mxu0 %v4781_v59 }
0x2654   :  { %2108 = vrot.lane.b32.xlu1 %v2107_v20, %s4131_s9  ;;  %3704 = vmatprep.subr.mxu0 %v4126_v12 }
0x2658   :  { %2112 = vrot.lane.b32.xlu1 %v4550_v22, %s4131_s9 }
0x265c   :  { %2123 = vrot.lane.b32.xlu1 %v4596_v30, %s4131_s9 }
0x2660   :  { %2131 = vrot.lane.b32.xlu1 %v4708_v53, %s4131_s9 }
0x26b6   :  { %v2085_v22 = vpop.permute.xlu1 %2084 }
0x26b7   :  { %v2087_v28 = vmul.f32 %v3976_v17, %v2085_v22 }
0x26b9   :  { %v2090_v30 = vrot.slane %v2087_v28, 6  ;;  %2139 = vrot.lane.b32.xlu1 %v2087_v28, %s4131_s9 }
0x26ba   :  { %v2097_v18 = vpop.permute.xlu1 %2096 }
0x26bb   :  { %2091 = vrot.lane.b32.xlu0 %v2090_v30, %s4131_s9 }
0x26be   :  { %v2101_v21 = vpop.permute.xlu1 %2100 }
0x26bf   :  { %2143 = vrot.lane.b32.xlu0 %v2142_v2, %s4131_s9  ;;  %v2103_v31 = vsel %vm2094_vm3, %v2097_v18, %v2101_v21 }
0x26c0   :  { %v2724_v13 = vrot.slane %v2103_v31, 1  ;;  %v3026_v39 = vrot.slane %v2103_v31, 2 }
0x26c2   :  { %v2105_v27 = vpop.permute.xlu1 %2104 }
0x26c6   :  { %v2109_v36 = vpop.permute.xlu1 %2108 }
0x26c7   :  { %v2111_v7 = vsel %vm2094_vm3, %v2105_v27, %v2109_v36 }
0x26c8   :  { %v2727_v47 = vrot.slane %v2111_v7, 2  ;;  %v3028_v49 = vrot.slane %v2111_v7, 3 }
0x26ca   :  { %v2113_v40 = vpop.permute.xlu1 %2112 }
0x26cb   :  { %v2119_v42 = vsel %vm2094_vm3, %v2113_v40, %v2117_v37 }
0x26cc   :  { %v2730_v54 = vrot.slane %v2119_v42, 3  ;;  %v3030_v51 = vrot.slane %v2119_v42, 4 }
0x26ce   :  { %v2124_v57 = vpop.permute.xlu1 %2123 }
0x26cf   :  { %v2130_v19 = vsel %vm2094_vm3, %v2124_v57, %v2128_v44 }
0x26d0   :  { %v2736_v15 = vrot.slane %v2130_v19, 5  ;;  %v3034_v6 = vrot.slane %v2130_v19, 6 }
0x26d2   :  { %v2132_v45 = vpop.permute.xlu1 %2131 }
0x26d3   :  { %v2138_v56 = vsel %vm2094_vm3, %v2132_v45, %v2136_v5 }
0x26d4   :  { %v3036_v9 = vrot.slane %v2138_v56, 7 }
0x2713   :  { %v4790_v26 = vpop.f32.mrb[20].mxu1 }
0x2714   :  { %v3670_v62 = vpop.f32.mrb[21].mxu1 }
0x2717   :  { %v2626_v53 = vpop.f32.mrb[22].mxu1 }
0x2718   :  { %v2634_v33 = vsub.f32 %v2626_v53, %v2633_v29  ;;  %v3686_v35 = vpop.f32.mrb[23].mxu1  ;;  %v2721_v29 = vld [vmem:[%s4895_s13] sm:$0xff]  ;;  %v2722_v53 = vld [vmem:[%s4895_s13 + $0x8] sm:$0x3]  ;;  %s4132_s13 = smov 48  }
0x271a   :  { %v2635_v50 = vsel %vm2376_vm2, %v2634_v33, -inf }
0x271b   :  { %2636 = vmax.xlane.f32.xlu1 %v2635_v50 }
0x272b   :  { %v2140_v38 = vpop.permute.xlu1 %2139 }
0x272d   :  { %v2092_v16 = vpop.permute.xlu0 %2091 }
0x272e   :  { %v2095_v1 = vsel %vm2094_vm3, %v4506_v52, %v2092_v16  ;;  %v2739_v52 = vrot.slane %v2138_v56, 6 }
0x272f   :  { %v2744_v48 = vsel %vm2176_vm12, %v2095_v1, %v2724_v13  ;;  %v3024_v61 = vrot.slane %v2095_v1, 1 }
0x2730   :  { %v2745_v25 = vsel %vm212_vm6, %v2744_v48, %v2727_v47 }
0x2731   :  { %v2746_v17 = vsel %vm2179_vm13, %v2745_v25, %v2730_v54  ;;  %v3038_v3 = vsel %vm2176_vm12, %v3024_v61, %v3026_v39  ;;  %v2144_v58 = vpop.permute.xlu0 %2143 }
0x2732   :  { %v2747_v46 = vsel %vm115_vm0, %v2746_v17, %v2733_v32  ;;  %v3039_v14 = vsel %vm212_vm6, %v3038_v3, %v3028_v49  ;;  %v2146_v23 = vsel %vm2094_vm3, %v2140_v38, %v2144_v58 }
0x2733   :  { %v3040_v63 = vsel %vm2179_vm13, %v3039_v14, %v3030_v51  ;;  %v2742_v4 = vrot.slane %v2146_v23, 7  ;;  %v2748_v55 = vsel %vm2182_vm14, %v2747_v46, %v2736_v15 }
0x2734   :  { %v3041_v20 = vsel %vm115_vm0, %v3040_v63, %v3032_v10  ;;  %v2749_v24 = vsel %vm2184_vm15, %v2748_v55, %v2739_v52  ;;  %vm3294_vm0 = vcmask 457728  }
0x2735   :  { %v3042_v11 = vsel %vm2182_vm14, %v3041_v20, %v3034_v6  ;;  %v2750_v22 = vsel %vm2186_vm1, %v2749_v24, %v2742_v4 }
0x2736   :  { %v3043_v28 = vsel %vm2184_vm15, %v3042_v11, %v3036_v9  ;;  %3697 = vmatmul.mubr.msk.f32.vlgmr.msra.gmra.mrb[22].mxu0 %vm1169_vm11, %v2750_v22 }
0x2737   :  { %v3044_v30 = vsel %vm2186_vm1, %v3043_v28, %v2146_v23  ;;  %3705 = vmatpush3.msra.mxu0 %v2750_v22  ;;  %3706 = vmatprep.mubr.msk.f32.mxu0 %vm4125_vm4, %v4126_v12 }
0x2738   :  { %3716 = vmatprep.subr.mxu0 %v4126_v12 }
0x27a8   :  { %v2637_v2 = vpop.xlane.xlu1 %2636 }
0x27a9   :  { %v2638_v18 = vsub.f32 %v2634_v33, %v2637_v2 }
0x27ab   :  { %v2639_v21 = vmul.f32 1.442695, %v2638_v18 }
0x27ad   :  { %3983 = vpow2.f32 %v2639_v21 }
0x27b7   :  { %v3984_v27 = vpop.eup %3983 }
0x27b8   :  { %v2641_v62 = vsel %vm2376_vm2, %v3984_v27, 0.0 }
0x27b9   :  { %2642 = vadd.xlane.f32.xlu0 %v2641_v62 }
0x27e6   :  { %2825 = vxpose.xlu0.b32.start [1/2] (short) (narrow) %v2721_v29, 8 }
0x27ea   :  { %2826 = vxpose.xlu0.b32.end [2/2] (short) (narrow) %v2722_v53, 8 }
0x2809   :  { %v2820_v35 = vpop.f32.mrb[22].mxu0 }
0x280a   :  { %v3698_v36 = vpop.f32.mrb[23].mxu0 }
0x2846   :  { %v2643_v50 = vpop.xlane.xlu0 %2642 }
0x2847   :  { %3985 = vrcp.f32 %v2643_v50 }
0x2848   :  { %3987 = vtanh.f32 %v2820_v35 }
0x2851   :  { %v3986_v33 = vpop.eup %3985 }
0x2852   :  { %v2645_v37 = vmul.f32 %v3986_v33, %v3984_v27  ;;  %v3988_v40 = vpop.eup %3987 }
0x2854   :  { %3690 = vmatmul.mubr.msk.f32.vlgmr.msra.gmra.mrb[24].mxu1 %vm2094_vm3, %v2645_v37 }
0x2855   :  { %3700 = vmatpush3.xpose.msk.msra.mxu1 %vm205_vm8, %v3988_v40  ;;  %3701 = vmatprep.mubr.msk.f32.mxu1 %vm4125_vm4, %v4126_v12 }
0x2856   :  { %3825 = vmatprep.subr.bf16.mxu1 %v4124_v8  ;;  %v2148_v8 = vld [vmem:[#allocation5] sm:$0x3] }
0x2857   :  { %v2933_v31 = vmul.f32 10000.0, %v2148_v8 }
0x2859   :  { %v2937_v7 = vrot.slane %v2933_v31, %v2373_v43  ;;  %v3195_v49 = vrot.slane %v2933_v31, %v2632_v34 }
0x2866   :  { %v2841_v44 = vpop.trf.xlu0 }
0x2867   :  { %3702 = vmatmul.mubr.msk.f32.vlgmr.msra.gmra.mrb[26].mxu1 %vm205_vm8, %v2841_v44 }
0x2868   :  { %3827 = vmatpush3.bf16.msra.mxu1 %v4781_v59  ;;  %3713 = vmatprep.mubr.msk.f32.mxu1 %vm4125_vm4, %v4126_v12 }
0x2869   :  { %3721 = vmatprep.subr.mxu1 %v4126_v12 }
0x286b   :  { %3714 = vmatmul.mubr.msk.f32.vlgmr.msra.gmra.mrb[28].mxu1 %vm1169_vm11, %v3044_v30 }
0x286c   :  { %3722 = vmatpush3.msra.mxu1 %v3044_v30  ;;  %3723 = vmatprep.mubr.msk.f32.mxu1 %vm4125_vm4, %v4126_v12 }
0x2927   :  { %v4845_v57 = vpop.f32.mrb[24].mxu1 }
0x2928   :  { %v3691_v5 = vpop.f32.mrb[25].mxu1 }
0x293a   :  { %v2929_v59 = vpop.f32.mrb[26].mxu1 }
0x293b   :  { %v2938_v42 = vsub.f32 %v2929_v59, %v2937_v7  ;;  %v3703_v45 = vpop.f32.mrb[27].mxu1 }
0x293d   :  { %v2939_v41 = vsel %vm2376_vm2, %v2938_v42, -inf }
0x293e   :  { %2940 = vmax.xlane.f32.xlu1 %v2939_v41  ;;  %v3114_v13 = vpop.f32.mrb[28].mxu1 }
0x293f   :  { %v3715_v16 = vpop.f32.mrb[29].mxu1 }
0x29cb   :  { %v2941_v39 = vpop.xlane.xlu1 %2940 }
0x29cc   :  { %v2942_v47 = vsub.f32 %v2938_v42, %v2941_v39 }
0x29ce   :  { %v2943_v19 = vmul.f32 1.442695, %v2942_v47 }
0x29d0   :  { %3989 = vpow2.f32 %v2943_v19 }
0x29da   :  { %v3990_v1 = vpop.eup %3989 }
0x29db   :  { %v2945_v54 = vsel %vm2376_vm2, %v3990_v1, 0.0 }
0x29dc   :  { %2946 = vadd.xlane.f32.xlu1 %v2945_v54 }
0x2a69   :  { %v2947_v56 = vpop.xlane.xlu1 %2946 }
0x2a6a   :  { %3991 = vrcp.f32 %v2947_v56 }
0x2a6b   :  { %3993 = vtanh.f32 %v3114_v13 }
0x2a74   :  { %v3992_v43 = vpop.eup %3991 }
0x2a75   :  { %v2949_v48 = vmul.f32 %v3992_v43, %v3990_v1  ;;  %v3994_v61 = vpop.eup %3993 }
0x2a77   :  { %3707 = vmatmul.mubr.msk.f32.vlgmr.msra.gmra.mrb[24].mxu0 %vm2094_vm3, %v2949_v48 }
0x2a78   :  { %3717 = vmatpush3.xpose.msk.msra.mxu0 %vm205_vm8, %v3994_v61  ;;  %3718 = vmatprep.mubr.msk.f32.mxu0 %vm4125_vm4, %v4126_v12  ;;  %vm3292_vm4 = vcmask 392192  }
0x2a7b   :  { %3719 = vmatmul.mubr.msk.f32.vlgmr.msra.gmra.mrb[26].mxu0 %vm205_vm8, %v2841_v44 }
0x2b4a   :  { %v3019_v32 = vpop.f32.mrb[24].mxu0 }
0x2b4b   :  { %v3708_v10 = vpop.f32.mrb[25].mxu0 }
0x2b4e   :  { %v3188_v25 = vpop.f32.mrb[26].mxu0 }
0x2b4f   :  { %v3196_v51 = vsub.f32 %v3188_v25, %v3195_v49  ;;  %v3720_v15 = vpop.f32.mrb[27].mxu0 }
0x2b51   :  { %v3197_v38 = vsel %vm2376_vm2, %v3196_v51, -inf }
0x2b52   :  { %3198 = vmax.xlane.f32.xlu1 %v3197_v38 }
0x2bdf   :  { %v3199_v17 = vpop.xlane.xlu1 %3198 }
0x2be0   :  { %v3200_v3 = vsub.f32 %v3196_v51, %v3199_v17 }
0x2be2   :  { %v3201_v58 = vmul.f32 1.442695, %v3200_v3 }
0x2be4   :  { %3995 = vpow2.f32 %v3201_v58 }
0x2bee   :  { %v3996_v52 = vpop.eup %3995 }
0x2bef   :  { %v3203_v12 = vsel %vm2376_vm2, %v3996_v52, 0.0 }
0x2bf0   :  { %3204 = vadd.xlane.f32.xlu1 %v3203_v12 }
0x2c01   :  { %3282 = vrot.lane.b32.xlu1 %v3019_v32, %s4128_s26 }
0x2c05   :  { %3285 = vrot.lane.b32.xlu1 %v4746_v60, %s4132_s13 }
0x2c09   :  { %3302 = vrot.lane.b32.xlu1 %v2645_v37, %s4132_s13 }
0x2c7d   :  { %v3205_v0 = vpop.xlane.xlu1 %3204 }
0x2c7e   :  { %3997 = vrcp.f32 %v3205_v0 }
0x2c81   :  { %v3283_v6 = vpop.permute.xlu1 %3282 }
0x2c82   :  { %v3291_v24 = vsel %vm310_vm10, %v4790_v26, %v3283_v6 }
0x2c85   :  { %v3286_v63 = vpop.permute.xlu1 %3285 }
0x2c86   :  { %v3293_v22 = vsel %vm3292_vm4, %v3291_v24, %v3286_v63 }
0x2c88   :  { %v3998_v34 = vpop.eup %3997 }
0x2c89   :  { %v3207_v46 = vmul.f32 %v3998_v34, %v3996_v52  ;;  %v3303_v4 = vpop.permute.xlu1 %3302 }
0x2c8b   :  { %3305 = vrot.lane.b32.xlu0 %v3207_v46, %s4133_s29  ;;  %3724 = vmatmul.mubr.msk.f32.vlgmr.msra.gmra.mrb[30].mxu1 %vm2094_vm3, %v3207_v46 }
0x2cfd   :  { %v3306_v9 = vpop.permute.xlu0 %3305 }
0x2d5e   :  { %v3277_v14 = vpop.f32.mrb[30].mxu1 }
0x2d5f   :  { %3299 = vrot.lane.b32.xlu1 %v3277_v14, %s4128_s26  ;;  %v3725_v23 = vpop.f32.mrb[31].mxu1  ;;  %s4087_s26 = scalar_lea.vmem %s3319_s2, 128 }
0x2d60   :  { %p4088_p4 = scmp.ne.s32.totalorder %s3319_s2, %s4087_s26  ;;  %p4093_p6 = scmp.lt.s32.totalorder %s4087_s26, %s4087_s26 }
0x2d62   :  { %p4094_p7 = por %p4093_p6, %p4092_p5 }
0x2d63   :  { %3288 = vrot.lane.b32.xlu1 %v2949_v48, %s4133_s29 }
0x2d64   :  { %p4095_p8 = pnand %p4094_p7, %p4088_p4 }
0x2dd1   :  { %v3300_v55 = vpop.permute.xlu1 %3299 }
0x2dd2   :  { %v3308_v60 = vsel %vm310_vm10, %v4845_v57, %v3300_v55 }
0x2dd3   :  { %v3309_v20 = vsel %vm3292_vm4, %v3308_v60, %v3303_v4 }
0x2dd4   :  { %v3310_v11 = vsel %vm3294_vm0, %v3309_v20, %v3306_v9 }
0x2dd5   :  { %v3289_v28 = vpop.permute.xlu1 %3288  ;;  %3312 = vst.msk [vmem:[#allocation10 + $0x4] sm:$0xf] %vm3296_vm5, %v3310_v11 }
0x2dd6   :  { %v3295_v30 = vsel %vm3294_vm0, %v3293_v22, %v3289_v28 }
0x2dd7   :  { %3297 = vst.msk [vmem:[#allocation10] sm:$0xf] %vm3296_vm5, %v3295_v30 }
0x2dd8   :  { %4098 = shalt.err (!%p4095_p8)
}
0x2dd9   :  { %s4099_s7 = scalar_lea.hbm %s4896_s14, 128 }
0x2dda   :  { %p4100_p9 = scmp.ne.s32.totalorder %s4896_s14, %s4099_s7  ;;  %p4103_p10 = scmp.lt.u32.totalorder %s4099_s7, %s4896_s14 }
0x2ddc   :  { %p4105_p11 = pnand %p4103_p10, %p4100_p9 }
0x2dde   :  { %4108 = shalt.err (!%p4105_p11)
}
0x2ddf   :  { %s4135_s20 = smov 4  }
0x2de0   :  { %3324 = dma.vmem_to_hbm [thread:$0]  %s3319_s2, 128, %s4896_s14, [#allocation4], %s4127_s6, %s4127_s6, %s4135_s20  }
0x2de1   :  { %4115 = dma.done.wait [#allocation4], 128  }
0x2de2   :  { %4116 = vsyncadd [#allocation4], 4294967168 }
0x2de3   :  { %3328 = vsyncpa [#allocation3], 1 }
0x2de4   :  { %3329 = vsyncpa [#allocation6], 1 }
0x2de5   :  { %3330 = vsyncpa [#allocation9], 1 }
0x2de6   :  { %3331 = vsyncpa [#allocation4], 1 }

</bundles_post_ra>
